<compile_context>
chip_gen: v7x
topology: tpu7x:2x2x1
jax: 0.10.0
libtpu: 0.0.40
codegen_flags: <defaults>
</compile_context>

<pallas_src>
import math

import jax
import jax.numpy as jnp
from jax.experimental import pallas as pl
from jax.experimental.pallas import tpu as pltpu

VMEM_SPEC = pl.BlockSpec(memory_space=pltpu.MemorySpace.VMEM)


# --------------------------- fused Pallas kernel ---------------------------
#
# Inputs (all full-array VMEM blocks; shapes are tiny):
#   p1  : (4*25*Bp, 25) bf16  conv1 im2col patches, quadrant-major rows
#                             row = ((a*2+c)*25 + r*5 + s)*Bp + b, tap di*5+dj
#   w1  : (25, 32)  bf16      conv1 weight, rows ordered (di, dj)
#   b1  : (1, 32)   f32
#   w2  : (128, 49) bf16      conv2 weight, rows ordered (di, dj, ci)
#   b2  : (1, 49)   f32
#   fw1 : (4, 49, 100) bf16   fc1 weight, [pooled-pos, channel, hidden]
#   fb1 : (1, 100)  f32
#   fw2 : (100, 10) bf16
#   fb2 : (1, 10)   f32
# Outputs:
#   out  : (Bp, 10) f32  rows = channel-major folded batch (ii*N + n), padded
#   rout : (N, 20)  f32  torch "reshaped_out"
def _classify_kernel(p1_ref, w1_ref, b1_ref, w2_ref, b2_ref,
                     fw1_ref, fb1_ref, fw2_ref, fb2_ref,
                     out_ref, rout_ref):
    bp = out_ref.shape[0]          # padded folded batch (multiple of 8)
    n = rout_ref.shape[0]          # true N
    f32 = jnp.float32
    bf16 = jnp.bfloat16

    # --- conv1 + bias: ONE matmul covering all 4 pooling quadrants ----------
    y1 = jnp.dot(p1_ref[...], w1_ref[...], preferred_element_type=f32)
    y1 = y1 + b1_ref[...]                                   # (100*bp, 32)
    # fused 2x2 maxpool (max over aligned quadrant row blocks) + relu
    q = 25 * bp
    z1 = jnp.maximum(jnp.maximum(y1[0:q], y1[q:2 * q]),
                     jnp.maximum(y1[2 * q:3 * q], y1[3 * q:4 * q]))
    z1 = jnp.maximum(z1, 0.0)                # (25*bp, 32), rows (r*5+s)*bp + b

    # --- conv2: build im2col once (quadrant-major rows) -> ONE matmul --------
    blocks = []
    for a in range(2):            # pooling quadrant row
        for c in range(2):        # pooling quadrant col
            for pi in range(2):   # pooled output row
                for pj in range(2):
                    taps = []
                    for di in range(2):      # conv2 kernel tap
                        for dj in range(2):
                            r = 2 * pi + a + di
                            s = 2 * pj + c + dj
                            row = (r * 5 + s) * bp           # multiple of 8
                            taps.append(z1[row:row + bp, :])          # (bp, 32)
                    blocks.append(jnp.concatenate(taps, axis=-1))     # (bp, 128)
    p2 = jnp.concatenate(blocks, axis=0).astype(bf16)                 # (16*bp, 128)
    y2 = jnp.dot(p2, w2_ref[...], preferred_element_type=f32) + b2_ref[...]
    # fused 2x2 maxpool (max over the 4 aligned quadrant chunks) + relu
    p = 4 * bp
    pooled = jnp.maximum(jnp.maximum(y2[0:p], y2[p:2 * p]),
                         jnp.maximum(y2[2 * p:3 * p], y2[3 * p:4 * p]))
    pooled = jnp.maximum(pooled, 0.0)        # (4*bp, 49), rows (pi*2+pj)*bp + b

    # --- fc1 + relu: accumulate chain over the 4 pooled positions ------------
    # (NCHW .view(-1,196) flatten permutation folded into fw1's (pos,ch) order.)
    h = fb1_ref[...]                                         # (1, 100) f32
    for pos in range(4):
        lhs = pooled[pos * bp:(pos + 1) * bp, :].astype(bf16)
        h = h + jnp.dot(lhs, fw1_ref[pos], preferred_element_type=f32)
    h = jnp.maximum(h, 0.0)                                  # (bp, 100)

    # --- fc2 + relu (the module applies relu after fc2 as well) --------------
    o = jnp.dot(h.astype(bf16), fw2_ref[...], preferred_element_type=f32)
    o = jnp.maximum(o + fb2_ref[...], 0.0)                   # (bp, 10)

    # Both outputs come from the in-register value o (no out_ref readback).
    out_ref[...] = o
    rout_ref[:, 0:10] = o[0:n, :]
    rout_ref[:, 10:20] = o[n:2 * n, :]


# ------------------------------ XLA-side glue -------------------------------

def _conv1_patches(x, bp):
    """x: (N, C, 14, 14) NCHW -> (4*25*bp, 25) bf16 quadrant-major conv1 patches.

    Row = ((a*2+c)*25 + r*5 + s)*bp + b, b = channel-major folded batch padded
    with zero rows to bp.  ~30 tiny XLA ops on the ~3 KB input; fuses into one
    fusion, and the HBM copy is bf16 (half the bytes of the f32 version).
    """
    n, cin, h, w = x.shape
    b = cin * n
    xb = jnp.transpose(x, (1, 0, 2, 3)).reshape(b, h, w)     # channel-major fold
    if bp > b:
        xb = jnp.pad(xb, ((0, bp - b), (0, 0), (0, 0)))
    cols = [xb[:, di:di + 10, dj:dj + 10] for di in range(5) for dj in range(5)]
    win = jnp.stack(cols, axis=-1)                    # (bp, 10, 10, 25)
    win = win.reshape(bp, 5, 2, 5, 2, 25)             # (b, r, a, s, c, k)
    win = jnp.transpose(win, (2, 4, 1, 3, 0, 5))      # (a, c, r, s, b, k)
    return win.reshape(4 * 25 * bp, 25).astype(jnp.bfloat16)


def prepare_params(params):
    """One-time (outside jit) weight-layout work: bf16 im2col weight matrices,
    transposed fc weights with the NCHW-flatten permutation folded into fc1's
    (pos, ch, hidden) layout, and f32 (1, n) biases."""
    w1 = jnp.transpose(params["conv1_w"], (2, 3, 1, 0)).reshape(25, 32)   # (di,dj)
    w2 = jnp.transpose(params["conv2_w"], (2, 3, 1, 0)).reshape(128, 49)  # (di,dj,ci)
    # torch flat feature = ch*4 + pos  ->  fw1[pos, ch, :] = fc1_w[:, ch*4+pos]
    fw1 = jnp.transpose(params["fc1_w"].T.reshape(49, 4, 100), (1, 0, 2))
    return {
        "w1": w1.astype(jnp.bfloat16),
        "b1": params["conv1_b"].reshape(1, 32),
        "w2": w2.astype(jnp.bfloat16),
        "b2": params["conv2_b"].reshape(1, 49),
        "fw1": fw1.astype(jnp.bfloat16),
        "fb1": params["fc1_b"].reshape(1, 100),
        "fw2": params["fc2_w"].T.astype(jnp.bfloat16),
        "fb2": params["fc2_b"].reshape(1, 10),
    }


def classify_net_forward(x, prep):
    """x: (N, 2, 14, 14) float32 -> (out (2N, 10), reshaped_out (N, 20))."""
    n = x.shape[0]
    b = x.shape[1] * n                       # folded batch = 2N
    bp = max(8, ((b + 7) // 8) * 8)          # pad to a sublane-tile multiple
    p1 = _conv1_patches(x, bp)
    out_p, rout = pl.pallas_call(
        _classify_kernel,
        out_shape=(jax.ShapeDtypeStruct((bp, 10), jnp.float32),
                   jax.ShapeDtypeStruct((n, 20), jnp.float32)),
        in_specs=[VMEM_SPEC] * 9,
        out_specs=(VMEM_SPEC, VMEM_SPEC),
        # Scaling note: for large N add a batch grid axis with
        # compiler_params=pltpu.CompilerParams(dimension_semantics=("parallel",))
        # (v7x's two TensorCores split the rows), constant index_maps on the
        # weight BlockSpecs (DMA'd once), and a per-generation batch tile:
        # ~128-256 rows for v7x's 64 MiB VMEM, ~256-512 for v5e/v6e's 128 MiB,
        # with vmem_limit_bytes raised explicitly.
    )(p1, prep["w1"], prep["b1"], prep["w2"], prep["b2"],
      prep["fw1"], prep["fb1"], prep["fw2"], prep["fb2"])
    return out_p[:b], rout


# ------------------------- params / reference / main -------------------------

def init_params(key):
    def uniform(k, shape, fan_in):
        bound = 1.0 / math.sqrt(fan_in)
        return jax.random.uniform(k, shape, jnp.float32, -bound, bound)

    ks = jax.random.split(key, 8)
    return {
        "conv1_w": uniform(ks[0], (32, 1, 5, 5), 1 * 5 * 5),
        "conv1_b": uniform(ks[1], (32,), 1 * 5 * 5),
        "conv2_w": uniform(ks[2], (49, 32, 2, 2), 32 * 2 * 2),
        "conv2_b": uniform(ks[3], (49,), 32 * 2 * 2),
        "fc1_w": uniform(ks[4], (100, 196), 196),
        "fc1_b": uniform(ks[5], (100,), 196),
        "fc2_w": uniform(ks[6], (10, 100), 100),
        "fc2_b": uniform(ks[7], (10,), 100),
    }


def _reference_forward(x, params):
    """Plain-XLA f32 reference mirroring the PyTorch module (self-check only)."""
    hi = jax.lax.Precision.HIGHEST
    n = x.shape[0]
    outs = []
    for ii in range(x.shape[1]):
        xi = x[:, ii:ii + 1, :, :]
        y = jax.lax.conv_general_dilated(
            xi, params["conv1_w"], (1, 1), "VALID",
            dimension_numbers=("NCHW", "OIHW", "NCHW"), precision=hi)
        y = y + params["conv1_b"][None, :, None, None]
        y = jax.lax.reduce_window(y, -jnp.inf, jax.lax.max,
                                  (1, 1, 2, 2), (1, 1, 2, 2), "VALID")
        y = jnp.maximum(y, 0.0)
        y = jax.lax.conv_general_dilated(
            y, params["conv2_w"], (1, 1), "VALID",
            dimension_numbers=("NCHW", "OIHW", "NCHW"), precision=hi)
        y = y + params["conv2_b"][None, :, None, None]
        y = jax.lax.reduce_window(y, -jnp.inf, jax.lax.max,
                                  (1, 1, 2, 2), (1, 1, 2, 2), "VALID")
        y = jnp.maximum(y, 0.0)
        flat = y.reshape(n, 196)
        h = jnp.maximum(jnp.dot(flat, params["fc1_w"].T, precision=hi)
                        + params["fc1_b"], 0.0)
        o = jnp.maximum(jnp.dot(h, params["fc2_w"].T, precision=hi)
                        + params["fc2_b"], 0.0)
        outs.append(o)
    return jnp.concatenate(outs, axis=0), jnp.concatenate(outs, axis=1)


if __name__ == "__main__":
    key = jax.random.PRNGKey(0)
    kx, kp = jax.random.split(key)
    x = jax.random.normal(kx, (2, 2, 14, 14), dtype=jnp.float32)   # N=2, C=2, 14x14
    params = init_params(kp)
    prep = prepare_params(params)        # hoisted weight-layout work (runs once)

    fwd = jax.jit(classify_net_forward)
    out, reshaped_out = fwd(x, prep)
    jax.block_until_ready((out, reshaped_out))

    assert out.shape == (4, 10) and out.dtype == jnp.float32
    assert reshaped_out.shape == (2, 20) and reshaped_out.dtype == jnp.float32
    # consistency of the PyTorch copy-out pattern (bit-exact: same register value)
    assert bool(jnp.all(reshaped_out[:, :10] == out[:2]))
    assert bool(jnp.all(reshaped_out[:, 10:] == out[2:]))
    # numerical check against a plain-XLA f32 reference (kernel uses bf16 MXU
    # inputs with f32 accumulation -> expected error ~1e-3, tolerance 2e-2)
    ref_out, ref_rout = jax.jit(_reference_forward)(x, params)
    assert bool(jnp.allclose(out, ref_out, atol=2e-2, rtol=2e-2))
    assert bool(jnp.allclose(reshaped_out, ref_rout, atol=2e-2, rtol=2e-2))
    print("KERNEL_OK")
</pallas_src>

<mosaic_0001>
module attributes {stable_mosaic.version = 11 : i64} {
  func.func @_classify_kernel(%arg0: memref<800x25xbf16, #tpu.memory_space<vmem>>, %arg1: memref<25x32xbf16, #tpu.memory_space<vmem>>, %arg2: memref<1x32xf32, #tpu.memory_space<vmem>>, %arg3: memref<128x49xbf16, #tpu.memory_space<vmem>>, %arg4: memref<1x49xf32, #tpu.memory_space<vmem>>, %arg5: memref<4x49x100xbf16, #tpu.memory_space<vmem>>, %arg6: memref<1x100xf32, #tpu.memory_space<vmem>>, %arg7: memref<100x10xbf16, #tpu.memory_space<vmem>>, %arg8: memref<1x10xf32, #tpu.memory_space<vmem>>, %arg9: memref<8x10xf32, #tpu.memory_space<vmem>>, %arg10: memref<2x20xf32, #tpu.memory_space<vmem>>) attributes {dimension_semantics = [], scalar_prefetch = 0 : i64, scratch_operands = 0 : i64, tpu.core_type = #tpu.core_type<tc>} {
    %c0 = arith.constant 0 : index
    %c0_0 = arith.constant 0 : index
    %0 = vector.load %arg0[%c0, %c0_0] : memref<800x25xbf16, #tpu.memory_space<vmem>>, vector<800x25xbf16>
    %c0_1 = arith.constant 0 : index
    %c0_2 = arith.constant 0 : index
    %1 = vector.load %arg1[%c0_1, %c0_2] : memref<25x32xbf16, #tpu.memory_space<vmem>>, vector<25x32xbf16>
    %cst = arith.constant dense<0.000000e+00> : vector<800x32xf32>
    %2 = tpu.matmul %0, %1, %cst {dimension_numbers = #tpu.dot_dimension_numbers<[1], [0], [0], [1], [0, 0, 1, 1], [], []>} : vector<800x25xbf16>, vector<25x32xbf16>, vector<800x32xf32> -> vector<800x32xf32>
    %c0_3 = arith.constant 0 : index
    %c0_4 = arith.constant 0 : index
    %3 = vector.load %arg2[%c0_3, %c0_4] : memref<1x32xf32, #tpu.memory_space<vmem>>, vector<1x32xf32>
    %4 = vector.broadcast %3 : vector<1x32xf32> to vector<800x32xf32>
    %5 = arith.addf %2, %4 : vector<800x32xf32>
    %6 = vector.extract_strided_slice %5 {offsets = [0, 0], sizes = [200, 32], strides = [1, 1]} : vector<800x32xf32> to vector<200x32xf32>
    %7 = vector.extract_strided_slice %5 {offsets = [200, 0], sizes = [200, 32], strides = [1, 1]} : vector<800x32xf32> to vector<200x32xf32>
    %8 = arith.maximumf %6, %7 : vector<200x32xf32>
    %9 = vector.extract_strided_slice %5 {offsets = [400, 0], sizes = [200, 32], strides = [1, 1]} : vector<800x32xf32> to vector<200x32xf32>
    %10 = vector.extract_strided_slice %5 {offsets = [600, 0], sizes = [200, 32], strides = [1, 1]} : vector<800x32xf32> to vector<200x32xf32>
    %11 = arith.maximumf %9, %10 : vector<200x32xf32>
    %12 = arith.maximumf %8, %11 : vector<200x32xf32>
    %cst_5 = arith.constant 0.000000e+00 : f32
    %13 = vector.broadcast %cst_5 : f32 to vector<200x32xf32>
    %14 = arith.maximumf %12, %13 : vector<200x32xf32>
    %15 = vector.extract_strided_slice %14 {offsets = [0, 0], sizes = [8, 32], strides = [1, 1]} : vector<200x32xf32> to vector<8x32xf32>
    %16 = vector.extract_strided_slice %14 {offsets = [8, 0], sizes = [8, 32], strides = [1, 1]} : vector<200x32xf32> to vector<8x32xf32>
    %17 = vector.extract_strided_slice %14 {offsets = [40, 0], sizes = [8, 32], strides = [1, 1]} : vector<200x32xf32> to vector<8x32xf32>
    %18 = vector.extract_strided_slice %14 {offsets = [48, 0], sizes = [8, 32], strides = [1, 1]} : vector<200x32xf32> to vector<8x32xf32>
    %19 = tpu.concatenate %15, %16, %17, %18 in 1 : vector<8x32xf32>, vector<8x32xf32>, vector<8x32xf32>, vector<8x32xf32> -> vector<8x128xf32>
    %20 = vector.extract_strided_slice %14 {offsets = [16, 0], sizes = [8, 32], strides = [1, 1]} : vector<200x32xf32> to vector<8x32xf32>
    %21 = vector.extract_strided_slice %14 {offsets = [24, 0], sizes = [8, 32], strides = [1, 1]} : vector<200x32xf32> to vector<8x32xf32>
    %22 = vector.extract_strided_slice %14 {offsets = [56, 0], sizes = [8, 32], strides = [1, 1]} : vector<200x32xf32> to vector<8x32xf32>
    %23 = vector.extract_strided_slice %14 {offsets = [64, 0], sizes = [8, 32], strides = [1, 1]} : vector<200x32xf32> to vector<8x32xf32>
    %24 = tpu.concatenate %20, %21, %22, %23 in 1 : vector<8x32xf32>, vector<8x32xf32>, vector<8x32xf32>, vector<8x32xf32> -> vector<8x128xf32>
    %25 = vector.extract_strided_slice %14 {offsets = [80, 0], sizes = [8, 32], strides = [1, 1]} : vector<200x32xf32> to vector<8x32xf32>
    %26 = vector.extract_strided_slice %14 {offsets = [88, 0], sizes = [8, 32], strides = [1, 1]} : vector<200x32xf32> to vector<8x32xf32>
    %27 = vector.extract_strided_slice %14 {offsets = [120, 0], sizes = [8, 32], strides = [1, 1]} : vector<200x32xf32> to vector<8x32xf32>
    %28 = vector.extract_strided_slice %14 {offsets = [128, 0], sizes = [8, 32], strides = [1, 1]} : vector<200x32xf32> to vector<8x32xf32>
    %29 = tpu.concatenate %25, %26, %27, %28 in 1 : vector<8x32xf32>, vector<8x32xf32>, vector<8x32xf32>, vector<8x32xf32> -> vector<8x128xf32>
    %30 = vector.extract_strided_slice %14 {offsets = [96, 0], sizes = [8, 32], strides = [1, 1]} : vector<200x32xf32> to vector<8x32xf32>
    %31 = vector.extract_strided_slice %14 {offsets = [104, 0], sizes = [8, 32], strides = [1, 1]} : vector<200x32xf32> to vector<8x32xf32>
    %32 = vector.extract_strided_slice %14 {offsets = [136, 0], sizes = [8, 32], strides = [1, 1]} : vector<200x32xf32> to vector<8x32xf32>
    %33 = vector.extract_strided_slice %14 {offsets = [144, 0], sizes = [8, 32], strides = [1, 1]} : vector<200x32xf32> to vector<8x32xf32>
    %34 = tpu.concatenate %30, %31, %32, %33 in 1 : vector<8x32xf32>, vector<8x32xf32>, vector<8x32xf32>, vector<8x32xf32> -> vector<8x128xf32>
    %35 = vector.extract_strided_slice %14 {offsets = [8, 0], sizes = [8, 32], strides = [1, 1]} : vector<200x32xf32> to vector<8x32xf32>
    %36 = vector.extract_strided_slice %14 {offsets = [16, 0], sizes = [8, 32], strides = [1, 1]} : vector<200x32xf32> to vector<8x32xf32>
    %37 = vector.extract_strided_slice %14 {offsets = [48, 0], sizes = [8, 32], strides = [1, 1]} : vector<200x32xf32> to vector<8x32xf32>
    %38 = vector.extract_strided_slice %14 {offsets = [56, 0], sizes = [8, 32], strides = [1, 1]} : vector<200x32xf32> to vector<8x32xf32>
    %39 = tpu.concatenate %35, %36, %37, %38 in 1 : vector<8x32xf32>, vector<8x32xf32>, vector<8x32xf32>, vector<8x32xf32> -> vector<8x128xf32>
    %40 = vector.extract_strided_slice %14 {offsets = [24, 0], sizes = [8, 32], strides = [1, 1]} : vector<200x32xf32> to vector<8x32xf32>
    %41 = vector.extract_strided_slice %14 {offsets = [32, 0], sizes = [8, 32], strides = [1, 1]} : vector<200x32xf32> to vector<8x32xf32>
    %42 = vector.extract_strided_slice %14 {offsets = [64, 0], sizes = [8, 32], strides = [1, 1]} : vector<200x32xf32> to vector<8x32xf32>
    %43 = vector.extract_strided_slice %14 {offsets = [72, 0], sizes = [8, 32], strides = [1, 1]} : vector<200x32xf32> to vector<8x32xf32>
    %44 = tpu.concatenate %40, %41, %42, %43 in 1 : vector<8x32xf32>, vector<8x32xf32>, vector<8x32xf32>, vector<8x32xf32> -> vector<8x128xf32>
    %45 = vector.extract_strided_slice %14 {offsets = [88, 0], sizes = [8, 32], strides = [1, 1]} : vector<200x32xf32> to vector<8x32xf32>
    %46 = vector.extract_strided_slice %14 {offsets = [96, 0], sizes = [8, 32], strides = [1, 1]} : vector<200x32xf32> to vector<8x32xf32>
    %47 = vector.extract_strided_slice %14 {offsets = [128, 0], sizes = [8, 32], strides = [1, 1]} : vector<200x32xf32> to vector<8x32xf32>
    %48 = vector.extract_strided_slice %14 {offsets = [136, 0], sizes = [8, 32], strides = [1, 1]} : vector<200x32xf32> to vector<8x32xf32>
    %49 = tpu.concatenate %45, %46, %47, %48 in 1 : vector<8x32xf32>, vector<8x32xf32>, vector<8x32xf32>, vector<8x32xf32> -> vector<8x128xf32>
    %50 = vector.extract_strided_slice %14 {offsets = [104, 0], sizes = [8, 32], strides = [1, 1]} : vector<200x32xf32> to vector<8x32xf32>
    %51 = vector.extract_strided_slice %14 {offsets = [112, 0], sizes = [8, 32], strides = [1, 1]} : vector<200x32xf32> to vector<8x32xf32>
    %52 = vector.extract_strided_slice %14 {offsets = [144, 0], sizes = [8, 32], strides = [1, 1]} : vector<200x32xf32> to vector<8x32xf32>
    %53 = vector.extract_strided_slice %14 {offsets = [152, 0], sizes = [8, 32], strides = [1, 1]} : vector<200x32xf32> to vector<8x32xf32>
    %54 = tpu.concatenate %50, %51, %52, %53 in 1 : vector<8x32xf32>, vector<8x32xf32>, vector<8x32xf32>, vector<8x32xf32> -> vector<8x128xf32>
    %55 = vector.extract_strided_slice %14 {offsets = [40, 0], sizes = [8, 32], strides = [1, 1]} : vector<200x32xf32> to vector<8x32xf32>
    %56 = vector.extract_strided_slice %14 {offsets = [48, 0], sizes = [8, 32], strides = [1, 1]} : vector<200x32xf32> to vector<8x32xf32>
    %57 = vector.extract_strided_slice %14 {offsets = [80, 0], sizes = [8, 32], strides = [1, 1]} : vector<200x32xf32> to vector<8x32xf32>
    %58 = vector.extract_strided_slice %14 {offsets = [88, 0], sizes = [8, 32], strides = [1, 1]} : vector<200x32xf32> to vector<8x32xf32>
    %59 = tpu.concatenate %55, %56, %57, %58 in 1 : vector<8x32xf32>, vector<8x32xf32>, vector<8x32xf32>, vector<8x32xf32> -> vector<8x128xf32>
    %60 = vector.extract_strided_slice %14 {offsets = [56, 0], sizes = [8, 32], strides = [1, 1]} : vector<200x32xf32> to vector<8x32xf32>
    %61 = vector.extract_strided_slice %14 {offsets = [64, 0], sizes = [8, 32], strides = [1, 1]} : vector<200x32xf32> to vector<8x32xf32>
    %62 = vector.extract_strided_slice %14 {offsets = [96, 0], sizes = [8, 32], strides = [1, 1]} : vector<200x32xf32> to vector<8x32xf32>
    %63 = vector.extract_strided_slice %14 {offsets = [104, 0], sizes = [8, 32], strides = [1, 1]} : vector<200x32xf32> to vector<8x32xf32>
    %64 = tpu.concatenate %60, %61, %62, %63 in 1 : vector<8x32xf32>, vector<8x32xf32>, vector<8x32xf32>, vector<8x32xf32> -> vector<8x128xf32>
    %65 = vector.extract_strided_slice %14 {offsets = [120, 0], sizes = [8, 32], strides = [1, 1]} : vector<200x32xf32> to vector<8x32xf32>
    %66 = vector.extract_strided_slice %14 {offsets = [128, 0], sizes = [8, 32], strides = [1, 1]} : vector<200x32xf32> to vector<8x32xf32>
    %67 = vector.extract_strided_slice %14 {offsets = [160, 0], sizes = [8, 32], strides = [1, 1]} : vector<200x32xf32> to vector<8x32xf32>
    %68 = vector.extract_strided_slice %14 {offsets = [168, 0], sizes = [8, 32], strides = [1, 1]} : vector<200x32xf32> to vector<8x32xf32>
    %69 = tpu.concatenate %65, %66, %67, %68 in 1 : vector<8x32xf32>, vector<8x32xf32>, vector<8x32xf32>, vector<8x32xf32> -> vector<8x128xf32>
    %70 = vector.extract_strided_slice %14 {offsets = [136, 0], sizes = [8, 32], strides = [1, 1]} : vector<200x32xf32> to vector<8x32xf32>
    %71 = vector.extract_strided_slice %14 {offsets = [144, 0], sizes = [8, 32], strides = [1, 1]} : vector<200x32xf32> to vector<8x32xf32>
    %72 = vector.extract_strided_slice %14 {offsets = [176, 0], sizes = [8, 32], strides = [1, 1]} : vector<200x32xf32> to vector<8x32xf32>
    %73 = vector.extract_strided_slice %14 {offsets = [184, 0], sizes = [8, 32], strides = [1, 1]} : vector<200x32xf32> to vector<8x32xf32>
    %74 = tpu.concatenate %70, %71, %72, %73 in 1 : vector<8x32xf32>, vector<8x32xf32>, vector<8x32xf32>, vector<8x32xf32> -> vector<8x128xf32>
    %75 = vector.extract_strided_slice %14 {offsets = [48, 0], sizes = [8, 32], strides = [1, 1]} : vector<200x32xf32> to vector<8x32xf32>
    %76 = vector.extract_strided_slice %14 {offsets = [56, 0], sizes = [8, 32], strides = [1, 1]} : vector<200x32xf32> to vector<8x32xf32>
    %77 = vector.extract_strided_slice %14 {offsets = [88, 0], sizes = [8, 32], strides = [1, 1]} : vector<200x32xf32> to vector<8x32xf32>
    %78 = vector.extract_strided_slice %14 {offsets = [96, 0], sizes = [8, 32], strides = [1, 1]} : vector<200x32xf32> to vector<8x32xf32>
    %79 = tpu.concatenate %75, %76, %77, %78 in 1 : vector<8x32xf32>, vector<8x32xf32>, vector<8x32xf32>, vector<8x32xf32> -> vector<8x128xf32>
    %80 = vector.extract_strided_slice %14 {offsets = [64, 0], sizes = [8, 32], strides = [1, 1]} : vector<200x32xf32> to vector<8x32xf32>
    %81 = vector.extract_strided_slice %14 {offsets = [72, 0], sizes = [8, 32], strides = [1, 1]} : vector<200x32xf32> to vector<8x32xf32>
    %82 = vector.extract_strided_slice %14 {offsets = [104, 0], sizes = [8, 32], strides = [1, 1]} : vector<200x32xf32> to vector<8x32xf32>
    %83 = vector.extract_strided_slice %14 {offsets = [112, 0], sizes = [8, 32], strides = [1, 1]} : vector<200x32xf32> to vector<8x32xf32>
    %84 = tpu.concatenate %80, %81, %82, %83 in 1 : vector<8x32xf32>, vector<8x32xf32>, vector<8x32xf32>, vector<8x32xf32> -> vector<8x128xf32>
    %85 = vector.extract_strided_slice %14 {offsets = [128, 0], sizes = [8, 32], strides = [1, 1]} : vector<200x32xf32> to vector<8x32xf32>
    %86 = vector.extract_strided_slice %14 {offsets = [136, 0], sizes = [8, 32], strides = [1, 1]} : vector<200x32xf32> to vector<8x32xf32>
    %87 = vector.extract_strided_slice %14 {offsets = [168, 0], sizes = [8, 32], strides = [1, 1]} : vector<200x32xf32> to vector<8x32xf32>
    %88 = vector.extract_strided_slice %14 {offsets = [176, 0], sizes = [8, 32], strides = [1, 1]} : vector<200x32xf32> to vector<8x32xf32>
    %89 = tpu.concatenate %85, %86, %87, %88 in 1 : vector<8x32xf32>, vector<8x32xf32>, vector<8x32xf32>, vector<8x32xf32> -> vector<8x128xf32>
    %90 = vector.extract_strided_slice %14 {offsets = [144, 0], sizes = [8, 32], strides = [1, 1]} : vector<200x32xf32> to vector<8x32xf32>
    %91 = vector.extract_strided_slice %14 {offsets = [152, 0], sizes = [8, 32], strides = [1, 1]} : vector<200x32xf32> to vector<8x32xf32>
    %92 = vector.extract_strided_slice %14 {offsets = [184, 0], sizes = [8, 32], strides = [1, 1]} : vector<200x32xf32> to vector<8x32xf32>
    %93 = vector.extract_strided_slice %14 {offsets = [192, 0], sizes = [8, 32], strides = [1, 1]} : vector<200x32xf32> to vector<8x32xf32>
    %94 = tpu.concatenate %90, %91, %92, %93 in 1 : vector<8x32xf32>, vector<8x32xf32>, vector<8x32xf32>, vector<8x32xf32> -> vector<8x128xf32>
    %95 = tpu.concatenate %19, %24, %29, %34, %39, %44, %49, %54, %59, %64, %69, %74, %79, %84, %89, %94 in 0 : vector<8x128xf32>, vector<8x128xf32>, vector<8x128xf32>, vector<8x128xf32>, vector<8x128xf32>, vector<8x128xf32>, vector<8x128xf32>, vector<8x128xf32>, vector<8x128xf32>, vector<8x128xf32>, vector<8x128xf32>, vector<8x128xf32>, vector<8x128xf32>, vector<8x128xf32>, vector<8x128xf32>, vector<8x128xf32> -> vector<128x128xf32>
    %96 = arith.truncf %95 : vector<128x128xf32> to vector<128x128xbf16>
    %c0_6 = arith.constant 0 : index
    %c0_7 = arith.constant 0 : index
    %97 = vector.load %arg3[%c0_6, %c0_7] : memref<128x49xbf16, #tpu.memory_space<vmem>>, vector<128x49xbf16>
    %cst_8 = arith.constant dense<0.000000e+00> : vector<128x49xf32>
    %98 = tpu.matmul %96, %97, %cst_8 {dimension_numbers = #tpu.dot_dimension_numbers<[1], [0], [0], [1], [0, 0, 1, 1], [], []>} : vector<128x128xbf16>, vector<128x49xbf16>, vector<128x49xf32> -> vector<128x49xf32>
    %c0_9 = arith.constant 0 : index
    %c0_10 = arith.constant 0 : index
    %99 = vector.load %arg4[%c0_9, %c0_10] : memref<1x49xf32, #tpu.memory_space<vmem>>, vector<1x49xf32>
    %100 = vector.broadcast %99 : vector<1x49xf32> to vector<128x49xf32>
    %101 = arith.addf %98, %100 : vector<128x49xf32>
    %102 = vector.extract_strided_slice %101 {offsets = [0, 0], sizes = [32, 49], strides = [1, 1]} : vector<128x49xf32> to vector<32x49xf32>
    %103 = vector.extract_strided_slice %101 {offsets = [32, 0], sizes = [32, 49], strides = [1, 1]} : vector<128x49xf32> to vector<32x49xf32>
    %104 = arith.maximumf %102, %103 : vector<32x49xf32>
    %105 = vector.extract_strided_slice %101 {offsets = [64, 0], sizes = [32, 49], strides = [1, 1]} : vector<128x49xf32> to vector<32x49xf32>
    %106 = vector.extract_strided_slice %101 {offsets = [96, 0], sizes = [32, 49], strides = [1, 1]} : vector<128x49xf32> to vector<32x49xf32>
    %107 = arith.maximumf %105, %106 : vector<32x49xf32>
    %108 = arith.maximumf %104, %107 : vector<32x49xf32>
    %cst_11 = arith.constant 0.000000e+00 : f32
    %109 = vector.broadcast %cst_11 : f32 to vector<32x49xf32>
    %110 = arith.maximumf %108, %109 : vector<32x49xf32>
    %c0_12 = arith.constant 0 : index
    %c0_13 = arith.constant 0 : index
    %111 = vector.load %arg6[%c0_12, %c0_13] : memref<1x100xf32, #tpu.memory_space<vmem>>, vector<1x100xf32>
    %112 = vector.extract_strided_slice %110 {offsets = [0, 0], sizes = [8, 49], strides = [1, 1]} : vector<32x49xf32> to vector<8x49xf32>
    %113 = arith.truncf %112 : vector<8x49xf32> to vector<8x49xbf16>
    %c0_14 = arith.constant 0 : index
    %c0_15 = arith.constant 0 : index
    %c0_16 = arith.constant 0 : index
    %114 = vector.load %arg5[%c0_14, %c0_15, %c0_16] : memref<4x49x100xbf16, #tpu.memory_space<vmem>>, vector<1x49x100xbf16>
    %115 = vector.shape_cast %114 : vector<1x49x100xbf16> to vector<49x100xbf16>
    %cst_17 = arith.constant dense<0.000000e+00> : vector<8x100xf32>
    %116 = tpu.matmul %113, %115, %cst_17 {dimension_numbers = #tpu.dot_dimension_numbers<[1], [0], [0], [1], [0, 0, 1, 1], [], []>} : vector<8x49xbf16>, vector<49x100xbf16>, vector<8x100xf32> -> vector<8x100xf32>
    %117 = vector.broadcast %111 : vector<1x100xf32> to vector<8x100xf32>
    %118 = arith.addf %117, %116 : vector<8x100xf32>
    %119 = vector.extract_strided_slice %110 {offsets = [8, 0], sizes = [8, 49], strides = [1, 1]} : vector<32x49xf32> to vector<8x49xf32>
    %120 = arith.truncf %119 : vector<8x49xf32> to vector<8x49xbf16>
    %c1 = arith.constant 1 : index
    %c0_18 = arith.constant 0 : index
    %c0_19 = arith.constant 0 : index
    %121 = vector.load %arg5[%c1, %c0_18, %c0_19] : memref<4x49x100xbf16, #tpu.memory_space<vmem>>, vector<1x49x100xbf16>
    %122 = vector.shape_cast %121 : vector<1x49x100xbf16> to vector<49x100xbf16>
    %cst_20 = arith.constant dense<0.000000e+00> : vector<8x100xf32>
    %123 = tpu.matmul %120, %122, %cst_20 {dimension_numbers = #tpu.dot_dimension_numbers<[1], [0], [0], [1], [0, 0, 1, 1], [], []>} : vector<8x49xbf16>, vector<49x100xbf16>, vector<8x100xf32> -> vector<8x100xf32>
    %124 = arith.addf %118, %123 : vector<8x100xf32>
    %125 = vector.extract_strided_slice %110 {offsets = [16, 0], sizes = [8, 49], strides = [1, 1]} : vector<32x49xf32> to vector<8x49xf32>
    %126 = arith.truncf %125 : vector<8x49xf32> to vector<8x49xbf16>
    %c2 = arith.constant 2 : index
    %c0_21 = arith.constant 0 : index
    %c0_22 = arith.constant 0 : index
    %127 = vector.load %arg5[%c2, %c0_21, %c0_22] : memref<4x49x100xbf16, #tpu.memory_space<vmem>>, vector<1x49x100xbf16>
    %128 = vector.shape_cast %127 : vector<1x49x100xbf16> to vector<49x100xbf16>
    %cst_23 = arith.constant dense<0.000000e+00> : vector<8x100xf32>
    %129 = tpu.matmul %126, %128, %cst_23 {dimension_numbers = #tpu.dot_dimension_numbers<[1], [0], [0], [1], [0, 0, 1, 1], [], []>} : vector<8x49xbf16>, vector<49x100xbf16>, vector<8x100xf32> -> vector<8x100xf32>
    %130 = arith.addf %124, %129 : vector<8x100xf32>
    %131 = vector.extract_strided_slice %110 {offsets = [24, 0], sizes = [8, 49], strides = [1, 1]} : vector<32x49xf32> to vector<8x49xf32>
    %132 = arith.truncf %131 : vector<8x49xf32> to vector<8x49xbf16>
    %c3 = arith.constant 3 : index
    %c0_24 = arith.constant 0 : index
    %c0_25 = arith.constant 0 : index
    %133 = vector.load %arg5[%c3, %c0_24, %c0_25] : memref<4x49x100xbf16, #tpu.memory_space<vmem>>, vector<1x49x100xbf16>
    %134 = vector.shape_cast %133 : vector<1x49x100xbf16> to vector<49x100xbf16>
    %cst_26 = arith.constant dense<0.000000e+00> : vector<8x100xf32>
    %135 = tpu.matmul %132, %134, %cst_26 {dimension_numbers = #tpu.dot_dimension_numbers<[1], [0], [0], [1], [0, 0, 1, 1], [], []>} : vector<8x49xbf16>, vector<49x100xbf16>, vector<8x100xf32> -> vector<8x100xf32>
    %136 = arith.addf %130, %135 : vector<8x100xf32>
    %cst_27 = arith.constant 0.000000e+00 : f32
    %137 = vector.broadcast %cst_27 : f32 to vector<8x100xf32>
    %138 = arith.maximumf %136, %137 : vector<8x100xf32>
    %139 = arith.truncf %138 : vector<8x100xf32> to vector<8x100xbf16>
    %c0_28 = arith.constant 0 : index
    %c0_29 = arith.constant 0 : index
    %140 = vector.load %arg7[%c0_28, %c0_29] : memref<100x10xbf16, #tpu.memory_space<vmem>>, vector<100x10xbf16>
    %cst_30 = arith.constant dense<0.000000e+00> : vector<8x10xf32>
    %141 = tpu.matmul %139, %140, %cst_30 {dimension_numbers = #tpu.dot_dimension_numbers<[1], [0], [0], [1], [0, 0, 1, 1], [], []>} : vector<8x100xbf16>, vector<100x10xbf16>, vector<8x10xf32> -> vector<8x10xf32>
    %c0_31 = arith.constant 0 : index
    %c0_32 = arith.constant 0 : index
    %142 = vector.load %arg8[%c0_31, %c0_32] : memref<1x10xf32, #tpu.memory_space<vmem>>, vector<1x10xf32>
    %143 = vector.broadcast %142 : vector<1x10xf32> to vector<8x10xf32>
    %144 = arith.addf %141, %143 : vector<8x10xf32>
    %cst_33 = arith.constant 0.000000e+00 : f32
    %145 = vector.broadcast %cst_33 : f32 to vector<8x10xf32>
    %146 = arith.maximumf %144, %145 : vector<8x10xf32>
    %c0_34 = arith.constant 0 : index
    %c0_35 = arith.constant 0 : index
    %147 = vector.load %arg9[%c0_34, %c0_35] : memref<8x10xf32, #tpu.memory_space<vmem>>, vector<8x10xf32>
    tpu.vector_store %arg9[%c0_34, %c0_35], %146 {strides = array<i32>} : memref<8x10xf32, #tpu.memory_space<vmem>>, vector<8x10xf32>,
    %148 = vector.extract_strided_slice %146 {offsets = [0, 0], sizes = [2, 10], strides = [1, 1]} : vector<8x10xf32> to vector<2x10xf32>
    %c0_36 = arith.constant 0 : index
    %c0_37 = arith.constant 0 : index
    %149 = vector.load %arg10[%c0_36, %c0_37] : memref<2x20xf32, #tpu.memory_space<vmem>>, vector<2x10xf32>
    tpu.vector_store %arg10[%c0_36, %c0_37], %148 {strides = array<i32>} : memref<2x20xf32, #tpu.memory_space<vmem>>, vector<2x10xf32>,
    %150 = vector.extract_strided_slice %146 {offsets = [2, 0], sizes = [2, 10], strides = [1, 1]} : vector<8x10xf32> to vector<2x10xf32>
    %c0_38 = arith.constant 0 : index
    %c10 = arith.constant 10 : index
    %151 = vector.load %arg10[%c0_38, %c10] : memref<2x20xf32, #tpu.memory_space<vmem>>, vector<2x10xf32>
    tpu.vector_store %arg10[%c0_38, %c10], %150 {strides = array<i32>} : memref<2x20xf32, #tpu.memory_space<vmem>>, vector<2x10xf32>,
    return
  }
}

</mosaic_0001>

<bundles_post_ra>
// kernel: classify_net_forward.1
= control target key start
LH: loop header
LB: loop body
LE: loop exit
PB: predicated region body
PF: predicated region fallthrough
CT: control target
= control target key end

     0   :  { %vm559_vm0 = vcmask 1043456   ;;  %vm560_vm1 = vcmask 1044480   ;;  %v2680_v2 = vmov 65535   ;;  %vm408_vm2 = vcmask 203776   ;;  %s3785_s0 = inlined_call_operand.vmem [shape: bf16[800,25], index: 0, kind: input, shape index: {}]   ;;  %s3786_s1 = inlined_call_operand.vmem [shape: bf16[25,32], index: 1, kind: input, shape index: {}]   ;;  %s3787_s2 = inlined_call_operand.vmem [shape: f32[1,32], index: 2, kind: input, shape index: {}]   ;;  %s3788_s3 = inlined_call_operand.vmem [shape: bf16[128,49], index: 3, kind: input, shape index: {}]   ;;  %s3789_s4 = inlined_call_operand.vmem [shape: f32[1,49], index: 4, kind: input, shape index: {}]   ;;  %s3790_s5 = inlined_call_operand.vmem [shape: bf16[4,49,100], index: 5, kind: input, shape index: {}]   ;;  %s3791_s6 = inlined_call_operand.vmem [shape: f32[1,100], index: 6, kind: input, shape index: {}]   ;;  %s3792_s7 = inlined_call_operand.vmem [shape: bf16[100,10], index: 7, kind: input, shape index: {}]   ;;  %s3793_s8 = inlined_call_operand.vmem [shape: f32[1,10], index: 8, kind: input, shape index: {}]   ;;  %s3794_s9 = inlined_call_operand.vmem [shape: f32[8,10], index: 9, kind: output, shape index: {0}]   ;;  %s3795_s10 = inlined_call_operand.hbm [shape: f32[2,20], index: 10, kind: output, shape index: {1}]  }
   0x1   :  { %v2573_v0 = vld [vmem:[%s3786_s1] sm:$0xff]   ;;  %v2574_v1 = vld [vmem:[%s3786_s1 + $0x8] sm:$0x1f]   ;;  %v561_v3 = vsel %vm559_vm0, 4294967295, %v2680_v2  ;;  %v2577_v8 = vld [vmem:[%s3785_s0 + $0x10] sm:$0xff]  }
   0x2   :  { %2225 = vmatprep.subr.bf16.mxu0 %v2573_v0  ;;  %2427 = vmatprep.subr.bf16.mxu1 %v2573_v0  ;;  %v2575_v4 = vld [vmem:[%s3785_s0] sm:$0xff]   ;;  %v562_v5 = vsel %vm560_vm1, %v561_v3, 0  ;;  %v2576_v7 = vld [vmem:[%s3785_s0 + $0x8] sm:$0xff]   ;;  %v2578_v9 = vld [vmem:[%s3785_s0 + $0x18] sm:$0xff]  }
   0x3   :  { %2226 = vmatpush3.bf16.msra.mxu0 %v2573_v0  ;;  %2429 = vmatpush3.bf16.msra.mxu1 %v2573_v0  ;;  %v564_v6 = vand.u32 %v2574_v1, %v562_v5  ;;  %v2579_v10 = vld [vmem:[%s3785_s0 + $0x20] sm:$0xff]   ;;  %v2580_v11 = vld [vmem:[%s3785_s0 + $0x28] sm:$0xff]   ;;  %v2581_v12 = vld [vmem:[%s3785_s0 + $0x30] sm:$0xff]  }
   0x4   :  { %2229 = vmatprep.mubr.msk.bf16.mxu0 %vm408_vm2, %v2575_v4  ;;  %v2582_v13 = vld [vmem:[%s3785_s0 + $0x38] sm:$0xff]   ;;  %v2583_v14 = vld [vmem:[%s3785_s0 + $0x40] sm:$0xff]   ;;  %v2604_v16 = vld [vmem:[%s3785_s0 + $0x148] sm:$0xff]  }
   0x5   :  { %2227 = vmatprep.subr.bf16.mxu0 %v564_v6  ;;  %2428 = vmatprep.subr.bf16.mxu1 %v564_v6  ;;  %v2603_v15 = vld [vmem:[%s3785_s0 + $0x140] sm:$0xff]   ;;  %v2607_v17 = vld [vmem:[%s3785_s0 + $0x150] sm:$0xff]   ;;  %v2584_v18 = vld [vmem:[%s3785_s0 + $0x48] sm:$0xff]  }
   0x6   :  { %2309 = vmatprep.mubr.msk.bf16.mxu1 %vm408_vm2, %v2603_v15  ;;  %v2608_v19 = vld [vmem:[%s3785_s0 + $0x158] sm:$0xff]   ;;  %v2611_v20 = vld [vmem:[%s3785_s0 + $0x160] sm:$0xff]   ;;  %v2585_v21 = vld [vmem:[%s3785_s0 + $0x50] sm:$0xff]  }
   0x7   :  { %2228 = vmatpush3.bf16.msra.mxu0 %v564_v6  ;;  %2430 = vmatpush3.bf16.msra.mxu1 %v564_v6  ;;  %v2586_v22 = vld [vmem:[%s3785_s0 + $0x58] sm:$0xff]   ;;  %v2612_v23 = vld [vmem:[%s3785_s0 + $0x168] sm:$0xff]   ;;  %v2615_v24 = vld [vmem:[%s3785_s0 + $0x170] sm:$0xff]  }
   0x8   :  { %v2587_v25 = vld [vmem:[%s3785_s0 + $0x60] sm:$0xff]   ;;  %v2616_v26 = vld [vmem:[%s3785_s0 + $0x178] sm:$0xff]   ;;  %v2588_v27 = vld [vmem:[%s3785_s0 + $0x68] sm:$0xff]  }
   0x9   :  { %v2619_v28 = vld [vmem:[%s3785_s0 + $0x180] sm:$0xff]   ;;  %v2589_v29 = vld [vmem:[%s3785_s0 + $0x70] sm:$0xff]   ;;  %v2620_v30 = vld [vmem:[%s3785_s0 + $0x188] sm:$0xff]  }
   0xa   :  { %2230 = vmatmul.mubr.msk.bf16.vlgmr.msra.gmra.mrb[0].mxu0 %vm408_vm2, %v2576_v7  ;;  %2310 = vmatmul.mubr.msk.bf16.vlgmr.msra.gmra.mrb[0].mxu1 %vm408_vm2, %v2604_v16  ;;  %v2590_v31 = vld [vmem:[%s3785_s0 + $0x78] sm:$0xff]   ;;  %v2591_v32 = vld [vmem:[%s3785_s0 + $0x80] sm:$0xff]   ;;  %v2592_v33 = vld [vmem:[%s3785_s0 + $0x88] sm:$0xff]  }
   0xb   :  { %2233 = vmatprep.mubr.msk.bf16.mxu0 %vm408_vm2, %v2577_v8  ;;  %2313 = vmatprep.mubr.msk.bf16.mxu1 %vm408_vm2, %v2607_v17 }
  0x12   :  { %2234 = vmatmul.mubr.msk.bf16.gmra.mrb[4].mxu0 %vm408_vm2, %v2578_v9  ;;  %2314 = vmatmul.mubr.msk.bf16.gmra.mrb[4].mxu1 %vm408_vm2, %v2608_v19 }
  0x13   :  { %2237 = vmatprep.mubr.msk.bf16.mxu0 %vm408_vm2, %v2579_v10  ;;  %2317 = vmatprep.mubr.msk.bf16.mxu1 %vm408_vm2, %v2611_v20 }
  0x1a   :  { %2238 = vmatmul.mubr.msk.bf16.gmra.mrb[8].mxu0 %vm408_vm2, %v2580_v11  ;;  %2318 = vmatmul.mubr.msk.bf16.gmra.mrb[8].mxu1 %vm408_vm2, %v2612_v23 }
  0x1b   :  { %2241 = vmatprep.mubr.msk.bf16.mxu0 %vm408_vm2, %v2581_v12  ;;  %2321 = vmatprep.mubr.msk.bf16.mxu1 %vm408_vm2, %v2615_v24 }
  0x22   :  { %2242 = vmatmul.mubr.msk.bf16.gmra.mrb[12].mxu0 %vm408_vm2, %v2582_v13  ;;  %2322 = vmatmul.mubr.msk.bf16.gmra.mrb[12].mxu1 %vm408_vm2, %v2616_v26 }
  0x23   :  { %2245 = vmatprep.mubr.msk.bf16.mxu0 %vm408_vm2, %v2583_v14  ;;  %2325 = vmatprep.mubr.msk.bf16.mxu1 %vm408_vm2, %v2619_v28 }
  0x2a   :  { %2246 = vmatmul.mubr.msk.bf16.gmra.mrb[16].mxu0 %vm408_vm2, %v2584_v18  ;;  %2326 = vmatmul.mubr.msk.bf16.gmra.mrb[16].mxu1 %vm408_vm2, %v2620_v30 }
  0x2b   :  { %2249 = vmatprep.mubr.msk.bf16.mxu0 %vm408_vm2, %v2585_v21 }
  0x32   :  { %2250 = vmatmul.mubr.msk.bf16.gmra.mrb[20].mxu0 %vm408_vm2, %v2586_v22 }
  0x33   :  { %2253 = vmatprep.mubr.msk.bf16.mxu0 %vm408_vm2, %v2587_v25 }
  0x3a   :  { %2254 = vmatmul.mubr.msk.bf16.gmra.mrb[24].mxu0 %vm408_vm2, %v2588_v27 }
  0x3b   :  { %2257 = vmatprep.mubr.msk.bf16.mxu0 %vm408_vm2, %v2589_v29 }
  0x42   :  { %2258 = vmatmul.mubr.msk.bf16.gmra.mrb[28].mxu0 %vm408_vm2, %v2590_v31 }
  0x43   :  { %2261 = vmatprep.mubr.msk.bf16.mxu0 %vm408_vm2, %v2591_v32 }
  0x44   :  { %16 = vsyncpa [#allocation3], 0  ;;  %v2593_v34 = vld [vmem:[%s3785_s0 + $0x90] sm:$0xff]   ;;  %v2594_v35 = vld [vmem:[%s3785_s0 + $0x98] sm:$0xff]   ;;  %s2681_s14 = smov 96   ;;  %s2682_s17 = smov 64  }
  0x45   :  { %v2595_v36 = vld [vmem:[%s3785_s0 + $0xa0] sm:$0xff]   ;;  %v2596_v37 = vld [vmem:[%s3785_s0 + $0xa8] sm:$0xff]   ;;  %v2597_v38 = vld [vmem:[%s3785_s0 + $0xb0] sm:$0xff]   ;;  %s2683_s20 = smov 32   ;;  %vm1111_vm3 = vcmask 261120   ;;  %vm1113_vm4 = vcmask 523264  }
  0x46   :  { %v2598_v39 = vld [vmem:[%s3785_s0 + $0xb8] sm:$0xff]   ;;  %v2599_v40 = vld [vmem:[%s3785_s0 + $0xc0] sm:$0xff]   ;;  %v2600_v41 = vld [vmem:[%s3785_s0 + $0xc8] sm:$0xff]   ;;  %vm1115_vm5 = vcmask 785408   ;;  %vm1544_vm6 = vcmask 1040384   ;;  %vm2686_vm7 = vmmov 0  }
  0x47   :  { %v2601_v42 = vld [vmem:[%s3785_s0 + $0xd0] sm:$0xff]   ;;  %v2602_v43 = vld [vmem:[%s3785_s0 + $0xd8] sm:$0xff]   ;;  %v2605_v44 = vld [vmem:[%s3785_s0 + $0xe0] sm:$0xff]   ;;  %vm1540_vm8 = vcmask 400384   ;;  %vm1893_vm9 = vcmask 1041408   ;;  %vm1889_vm10 = vcmask 818176  }
  0x48   :  { %v2606_v45 = vld [vmem:[%s3785_s0 + $0xe8] sm:$0xff]   ;;  %v2609_v46 = vld [vmem:[%s3785_s0 + $0xf0] sm:$0xff]   ;;  %v2610_v47 = vld [vmem:[%s3785_s0 + $0xf8] sm:$0xff]   ;;  %vm1938_vm11 = vcmask 80896   ;;  %vm1940_vm12 = vcmask 74752   ;;  %s2687_s30 = smov 10  }
  0x49   :  { %v2613_v48 = vld [vmem:[%s3785_s0 + $0x100] sm:$0xff]   ;;  %v2614_v49 = vld [vmem:[%s3785_s0 + $0x108] sm:$0xff]   ;;  %v2617_v50 = vld [vmem:[%s3785_s0 + $0x110] sm:$0xff]   ;;  %s2688_s11 = smov [#allocation2]   ;;  %vm1946_vm13 = vcmask 158802  }
  0x4a   :  { %2262 = vmatmul.mubr.msk.bf16.gmra.mrb[32].mxu0 %vm408_vm2, %v2592_v33  ;;  %v2618_v51 = vld [vmem:[%s3785_s0 + $0x118] sm:$0xff]   ;;  %v2621_v52 = vld [vmem:[%s3785_s0 + $0x120] sm:$0xff]   ;;  %v2622_v53 = vld [vmem:[%s3785_s0 + $0x128] sm:$0xff]  }
  0x4b   :  { %2265 = vmatprep.mubr.msk.bf16.mxu0 %vm408_vm2, %v2593_v34  ;;  %v2623_v54 = vld [vmem:[%s3785_s0 + $0x130] sm:$0xff]   ;;  %v2624_v55 = vld [vmem:[%s3785_s0 + $0x138] sm:$0xff]   ;;  %v3015_v29 = vld [vmem:[%s3787_s2] ss:$0 sm:$0xff]  ;;  %s1956_s0 = sshll.u32 %s2688_s11, 4  ;;  %s1957_s0 = int_to_ptr.vmem [resolvable:$true] %s1956_s0 }
  0x4c   :  { %p2661_p1 = scmp.lt.s32.totalorder %s1957_s0, %s1957_s0 }
  0x52   :  { %2266 = vmatmul.mubr.msk.bf16.gmra.mrb[36].mxu0 %vm408_vm2, %v2594_v35 }
  0x53   :  { %2269 = vmatprep.mubr.msk.bf16.mxu0 %vm408_vm2, %v2595_v36 }
  0x5a   :  { %2270 = vmatmul.mubr.msk.bf16.gmra.mrb[40].mxu0 %vm408_vm2, %v2596_v37 }
  0x5b   :  { %2273 = vmatprep.mubr.msk.bf16.mxu0 %vm408_vm2, %v2597_v38 }
  0x62   :  { %2274 = vmatmul.mubr.msk.bf16.gmra.mrb[44].mxu0 %vm408_vm2, %v2598_v39 }
  0x63   :  { %2277 = vmatprep.mubr.msk.bf16.mxu0 %vm408_vm2, %v2599_v40 }
  0x6a   :  { %2278 = vmatmul.mubr.msk.bf16.gmra.mrb[48].mxu0 %vm408_vm2, %v2600_v41 }
  0x6b   :  { %2281 = vmatprep.mubr.msk.bf16.mxu0 %vm408_vm2, %v2601_v42 }
  0x72   :  { %2282 = vmatmul.mubr.msk.bf16.gmra.mrb[52].mxu0 %vm408_vm2, %v2602_v43 }
  0x73   :  { %2285 = vmatprep.mubr.msk.bf16.mxu0 %vm408_vm2, %v2605_v44 }
  0x7a   :  { %2286 = vmatmul.mubr.msk.bf16.gmra.mrb[56].mxu0 %vm408_vm2, %v2606_v45 }
  0x7b   :  { %2289 = vmatprep.mubr.msk.bf16.mxu0 %vm408_vm2, %v2609_v46 }
  0x82   :  { %2290 = vmatmul.mubr.msk.bf16.gmra.mrb[60].mxu0 %vm408_vm2, %v2610_v47 }
  0x83   :  { %2293 = vmatprep.mubr.msk.bf16.mxu0 %vm408_vm2, %v2613_v48 }
  0x8a   :  { %2294 = vmatmul.mubr.msk.bf16.gmra.mrb[64].mxu0 %vm408_vm2, %v2614_v49 }
  0x8b   :  { %2297 = vmatprep.mubr.msk.bf16.mxu0 %vm408_vm2, %v2617_v50 }
  0x92   :  { %2298 = vmatmul.mubr.msk.bf16.gmra.mrb[68].mxu0 %vm408_vm2, %v2618_v51 }
  0x93   :  { %2301 = vmatprep.mubr.msk.bf16.mxu0 %vm408_vm2, %v2621_v52 }
  0x9a   :  { %2302 = vmatmul.mubr.msk.bf16.gmra.mrb[72].mxu0 %vm408_vm2, %v2622_v53 }
  0x9b   :  { %2305 = vmatprep.mubr.msk.bf16.mxu0 %vm408_vm2, %v2623_v54 }
  0xa2   :  { %2306 = vmatmul.mubr.msk.bf16.gmra.mrb[76].mxu0 %vm408_vm2, %v2624_v55 }
  0xdd   :  { %v2231_v56 = vpop.f32.mrb[0].mxu0  ;;  %v2962_v4 = vpop.f32.mrb[0].mxu1 }
  0xde   :  { %v600_v57 = vpop.f32.mrb[1].mxu0  ;;  %v2966_v6 = vpop.f32.mrb[1].mxu1  ;;  %v3032_v38 = vadd.f32 %v2231_v56, %v3015_v29 }
  0xdf   :  { %v2232_v58 = vpop.f32.mrb[2].mxu0  ;;  %v2970_v8 = vpop.f32.mrb[2].mxu1  ;;  %v3040_v42 = vadd.f32 %v3015_v29, %v600_v57 }
  0xe0   :  { %v603_v59 = vpop.f32.mrb[3].mxu0  ;;  %v2974_v10 = vpop.f32.mrb[3].mxu1  ;;  %3814 = vst [vmem:[#allocation7_spill] sm:$0xff] %v3032_v38  ;;  %v3062_v53 = vadd.f32 %v2232_v58, %v3015_v29 }
  0xe1   :  { %v3020_v32 = vadd.f32 %v3015_v29, %v603_v59  ;;  %3816 = vst [vmem:[#allocation9_spill] sm:$0xff] %v3040_v42 }
  0xe2   :  { %3820 = vst [vmem:[#allocation13_spill] sm:$0xff] %v3062_v53 }
  0xe3   :  { %3812 = vst [vmem:[#allocation5_spill] sm:$0xff] %v3020_v32 }
  0xe5   :  { %v2235_v60 = vpop.f32.mrb[4].mxu0  ;;  %v2978_v12 = vpop.f32.mrb[4].mxu1 }
  0xe6   :  { %v2950_v61 = vpop.f32.mrb[5].mxu0  ;;  %v2982_v14 = vpop.f32.mrb[5].mxu1  ;;  %v3070_v57 = vadd.f32 %v2235_v60, %v3015_v29 }
  0xe7   :  { %v2952_v62 = vpop.f32.mrb[6].mxu0  ;;  %v2986_v16 = vpop.f32.mrb[6].mxu1  ;;  %v3079_v58 = vadd.f32 %v3015_v29, %v2950_v61 }
  0xe8   :  { %v619_v63 = vpop.f32.mrb[7].mxu0  ;;  %v2990_v18 = vpop.f32.mrb[7].mxu1  ;;  %v3099_v39 = vadd.f32 %v2952_v62, %v3015_v29 }
  0xe9   :  { %v3054_v49 = vadd.f32 %v3015_v29, %v619_v63  ;;  %3823 = vst [vmem:[#allocation16_spill] sm:$0xff] %v3079_v58 }
  0xed   :  { %v2954_v0 = vpop.f32.mrb[8].mxu0  ;;  %v2994_v20 = vpop.f32.mrb[8].mxu1 }
  0xee   :  { %v2956_v1 = vpop.f32.mrb[9].mxu0  ;;  %v2998_v22 = vpop.f32.mrb[9].mxu1 }
  0xef   :  { %v2958_v2 = vpop.f32.mrb[10].mxu0  ;;  %v3002_v24 = vpop.f32.mrb[10].mxu1  ;;  %v3115_v60 = vadd.f32 %v3015_v29, %v2956_v1 }
  0xf0   :  { %v2960_v3 = vpop.f32.mrb[11].mxu0  ;;  %v3006_v26 = vpop.f32.mrb[11].mxu1  ;;  %v3135_v62 = vadd.f32 %v2958_v2, %v3015_v29 }
  0xf5   :  { %v2964_v5 = vpop.f32.mrb[12].mxu0  ;;  %v3010_v28 = vpop.f32.mrb[12].mxu1 }
  0xf6   :  { %v2968_v7 = vpop.f32.mrb[13].mxu0  ;;  %v3017_v31 = vpop.f32.mrb[13].mxu1 }
  0xf7   :  { %v2972_v9 = vpop.f32.mrb[14].mxu0  ;;  %v3027_v35 = vpop.f32.mrb[14].mxu1 }
  0xf8   :  { %v2976_v11 = vpop.f32.mrb[15].mxu0  ;;  %v3029_v37 = vpop.f32.mrb[15].mxu1  ;;  %v3171_v2 = vadd.f32 %v2972_v9, %v3015_v29 }
  0xfd   :  { %v2980_v13 = vpop.f32.mrb[16].mxu0  ;;  %v3049_v46 = vpop.f32.mrb[16].mxu1 }
  0xfe   :  { %v2984_v15 = vpop.f32.mrb[17].mxu0  ;;  %3818 = vst [vmem:[#allocation11_spill] sm:$0xff] %v3049_v46  ;;  %v3051_v48 = vpop.f32.mrb[17].mxu1 }
  0xff   :  { %v2988_v17 = vpop.f32.mrb[18].mxu0  ;;  %v3059_v52 = vpop.f32.mrb[18].mxu1 }
 0x100   :  { %v2992_v19 = vpop.f32.mrb[19].mxu0  ;;  %3819 = vst [vmem:[#allocation12_spill] sm:$0xff] %v3059_v52  ;;  %v3067_v56 = vpop.f32.mrb[19].mxu1  ;;  %v3207_v9 = vadd.f32 %v2988_v17, %v3015_v29 }
 0x101   :  { %3822 = vst [vmem:[#allocation15_spill] sm:$0xff] %v3067_v56 }
 0x102   :  { %3825 = vst [vmem:[#allocation18_spill] sm:$0xff] %v3207_v9 }
 0x105   :  { %v2996_v21 = vpop.f32.mrb[20].mxu0 }
 0x106   :  { %v3000_v23 = vpop.f32.mrb[21].mxu0 }
 0x107   :  { %v3004_v25 = vpop.f32.mrb[22].mxu0  ;;  %v3223_v46 = vadd.f32 %v3015_v29, %v3000_v23 }
 0x108   :  { %v3008_v27 = vpop.f32.mrb[23].mxu0  ;;  %v3238_v52 = vadd.f32 %v3004_v25, %v3015_v29 }
 0x10a   :  { %3830 = vst [vmem:[#allocation23_spill] sm:$0xff] %v3238_v52 }
 0x10d   :  { %v2255_v30 = vpop.f32.mrb[24].mxu0 }
 0x10e   :  { %v3023_v33 = vadd.f32 %v2255_v30, %v3015_v29  ;;  %v3025_v34 = vpop.f32.mrb[25].mxu0 }
 0x10f   :  { %v2256_v36 = vpop.f32.mrb[26].mxu0 }
 0x110   :  { %3813 = vst [vmem:[#allocation6_spill] sm:$0xff] %v3023_v33  ;;  %v3037_v40 = vadd.f32 %v2256_v36, %v3015_v29  ;;  %v699_v41 = vpop.f32.mrb[27].mxu0 }
 0x111   :  { %v3043_v43 = vadd.f32 %v3015_v29, %v699_v41 }
 0x112   :  { %3815 = vst [vmem:[#allocation8_spill] sm:$0xff] %v3037_v40 }
 0x113   :  { %3817 = vst [vmem:[#allocation10_spill] sm:$0xff] %v3043_v43 }
 0x115   :  { %v2259_v47 = vpop.f32.mrb[28].mxu0 }
 0x116   :  { %v3057_v50 = vadd.f32 %v2259_v47, %v3015_v29  ;;  %v712_v51 = vpop.f32.mrb[29].mxu0  ;;  %v3106_v47 = vadd.f32 %v2954_v0, %v3015_v29 }
 0x117   :  { %v3065_v54 = vadd.f32 %v3015_v29, %v712_v51  ;;  %v2260_v55 = vpop.f32.mrb[30].mxu0 }
 0x118   :  { %v3075_v63 = vadd.f32 %v2260_v55, %v3015_v29  ;;  %v715_v30 = vpop.f32.mrb[31].mxu0  ;;  %v3092_v55 = vadd.f32 %v3015_v29, %v2960_v3  ;;  %v3142_v3 = vadd.f32 %v2964_v5, %v3015_v29 }
 0x119   :  { %3821 = vst [vmem:[#allocation14_spill] sm:$0xff] %v3065_v54  ;;  %v3084_v41 = vadd.f32 %v3015_v29, %v715_v30  ;;  %v3187_v54 = vadd.f32 %v3015_v29, %v2984_v15 }
 0x11b   :  { %3824 = vst [vmem:[#allocation17_spill] sm:$0xff] %v3084_v41  ;;  %v3151_v41 = vadd.f32 %v3015_v29, %v2968_v7 }
 0x11d   :  { %v2263_v51 = vpop.f32.mrb[32].mxu0 }
 0x11e   :  { %v3095_v61 = vadd.f32 %v2263_v51, %v3015_v29  ;;  %v728_v44 = vpop.f32.mrb[33].mxu0 }
 0x11f   :  { %v3102_v30 = vadd.f32 %v3015_v29, %v728_v44  ;;  %v2264_v36 = vpop.f32.mrb[34].mxu0 }
 0x120   :  { %v3111_v45 = vadd.f32 %v2264_v36, %v3015_v29  ;;  %v731_v51 = vpop.f32.mrb[35].mxu0  ;;  %v3128_v36 = vadd.f32 %v3015_v29, %v2976_v11  ;;  %v3178_v11 = vadd.f32 %v2980_v13, %v3015_v29 }
 0x121   :  { %v3120_v44 = vadd.f32 %v3015_v29, %v731_v51 }
 0x125   :  { %v2267_v59 = vpop.f32.mrb[36].mxu0 }
 0x126   :  { %v3131_v1 = vadd.f32 %v2267_v59, %v3015_v29  ;;  %v744_v40 = vpop.f32.mrb[37].mxu0 }
 0x127   :  { %v3138_v51 = vadd.f32 %v3015_v29, %v744_v40  ;;  %v2268_v0 = vpop.f32.mrb[38].mxu0 }
 0x128   :  { %v3147_v38 = vadd.f32 %v2268_v0, %v3015_v29  ;;  %v747_v59 = vpop.f32.mrb[39].mxu0  ;;  %v3164_v0 = vadd.f32 %v3015_v29, %v2992_v19  ;;  %v3214_v19 = vadd.f32 %v2996_v21, %v3015_v29  ;;  %v3836_v21 = vmax.f32 %v3054_v49, %v3057_v50 }
 0x129   :  { %v3156_v40 = vadd.f32 %v3015_v29, %v747_v59 }
 0x12a   :  { %3827 = vst [vmem:[#allocation20_spill] sm:$0xff] %v3214_v19 }
 0x12d   :  { %v2271_v58 = vpop.f32.mrb[40].mxu0 }
 0x12e   :  { %v3167_v7 = vadd.f32 %v2271_v58, %v3015_v29  ;;  %v760_v33 = vpop.f32.mrb[41].mxu0 }
 0x12f   :  { %v3174_v59 = vadd.f32 %v3015_v29, %v760_v33  ;;  %v2272_v5 = vpop.f32.mrb[42].mxu0 }
 0x130   :  { %v3183_v32 = vadd.f32 %v2272_v5, %v3015_v29  ;;  %v763_v58 = vpop.f32.mrb[43].mxu0  ;;  %v3200_v5 = vadd.f32 %v3015_v29, %v3008_v27 }
 0x131   :  { %v3192_v33 = vadd.f32 %v3015_v29, %v763_v58 }
 0x135   :  { %v2275_v53 = vpop.f32.mrb[44].mxu0 }
 0x136   :  { %v3203_v15 = vadd.f32 %v2275_v53, %v3015_v29  ;;  %v776_v43 = vpop.f32.mrb[45].mxu0 }
 0x137   :  { %v3210_v58 = vadd.f32 %v3015_v29, %v776_v43  ;;  %v2276_v13 = vpop.f32.mrb[46].mxu0 }
 0x138   :  { %v3219_v42 = vadd.f32 %v2276_v13, %v3015_v29  ;;  %v779_v53 = vpop.f32.mrb[47].mxu0 }
 0x139   :  { %3826 = vst [vmem:[#allocation19_spill] sm:$0xff] %v3210_v58  ;;  %v3228_v43 = vadd.f32 %v3015_v29, %v779_v53  ;;  %v3247_v58 = vadd.f32 %v3015_v29, %v3025_v34 }
 0x13a   :  { %3828 = vst [vmem:[#allocation21_spill] sm:$0xff] %v3219_v42 }
 0x13d   :  { %v3234_v56 = vpop.f32.mrb[48].mxu0 }
 0x13e   :  { %3829 = vst [vmem:[#allocation22_spill] sm:$0xff] %v3234_v56  ;;  %v792_v13 = vpop.f32.mrb[49].mxu0 }
 0x13f   :  { %v3241_v23 = vadd.f32 %v3015_v29, %v792_v13  ;;  %v3243_v17 = vpop.f32.mrb[50].mxu0 }
 0x140   :  { %3832 = vst [vmem:[#allocation25_spill] sm:$0xff] %v3243_v17  ;;  %v795_v53 = vpop.f32.mrb[51].mxu0  ;;  %v921_v17 = vadd.f32 %v3015_v29, %v2966_v6 }
 0x141   :  { %3831 = vst [vmem:[#allocation24_spill] sm:$0xff] %v3241_v23  ;;  %v3252_v27 = vadd.f32 %v3015_v29, %v795_v53  ;;  %v932_v53 = vadd.f32 %v2970_v8, %v3015_v29 }
 0x145   :  { %v3256_v42 = vpop.f32.mrb[52].mxu0 }
 0x146   :  { %3833 = vst [vmem:[#allocation26_spill] sm:$0xff] %v3256_v42  ;;  %v3258_v13 = vpop.f32.mrb[53].mxu0 }
 0x147   :  { %3834 = vst [vmem:[#allocation27_spill] sm:$0xff] %v3258_v13  ;;  %v2284_v19 = vpop.f32.mrb[54].mxu0  ;;  %v924_v13 = vadd.f32 %v3015_v29, %v2974_v10  ;;  %v3837_v10 = vmax.f32 %v3115_v60, %v3120_v44 }
 0x148   :  { %v820_v34 = vadd.f32 %v2284_v19, %v3015_v29  ;;  %v3263_v56 = vpop.f32.mrb[55].mxu0  ;;  %v937_v19 = vadd.f32 %v3015_v29, %v2982_v14  ;;  %v3838_v14 = vmax.f32 %v3070_v57, %v3075_v63  ;;  %v3840_v57 = vmax.f32 %v3099_v39, %v3102_v30 }
 0x149   :  { %3835 = vst [vmem:[#allocation28_spill] sm:$0xff] %v3263_v56 }
 0x14a   :  { %v1029_v9 = vmax.f32 %v820_v34, %v921_v17  ;;  %v929_v17 = vadd.f32 %v2962_v4, %v3015_v29 }
 0x14c   :  { %v3270_v25 = vmax.f32 %v3836_v21, %v1029_v9 }
 0x14d   :  { %v2287_v42 = vpop.f32.mrb[56].mxu0 }
 0x14e   :  { %v833_v6 = vadd.f32 %v2287_v42, %v3015_v29  ;;  %v824_v23 = vpop.f32.mrb[57].mxu0 }
 0x14f   :  { %v825_v8 = vadd.f32 %v3015_v29, %v824_v23  ;;  %v2288_v34 = vpop.f32.mrb[58].mxu0 }
 0x150   :  { %v1032_v56 = vmax.f32 %v833_v6, %v932_v53  ;;  %v836_v49 = vadd.f32 %v2288_v34, %v3015_v29  ;;  %v827_v50 = vpop.f32.mrb[59].mxu0  ;;  %v3839_v6 = vmax.f32 %v3092_v55, %v3095_v61  ;;  %v953_v61 = vadd.f32 %v3015_v29, %v2998_v22 }
 0x151   :  { %v1030_v9 = vmax.f32 %v825_v8, %v924_v13  ;;  %v828_v21 = vadd.f32 %v3015_v29, %v827_v50  ;;  %v948_v8 = vadd.f32 %v2986_v16, %v3015_v29 }
 0x152   :  { %v3285_v42 = vmax.f32 %v3837_v10, %v1032_v56  ;;  %v1033_v52 = vmax.f32 %v836_v49, %v937_v19  ;;  %v2625_v56 = vld [vmem:[%s3788_s3] sm:$0xff]   ;;  %v940_v19 = vadd.f32 %v3015_v29, %v2990_v18  ;;  %v3841_v10 = vmax.f32 %v3151_v41, %v3156_v40 }
 0x153   :  { %v3290_v4 = vmax.f32 %v3838_v14, %v1030_v9  ;;  %v1031_v23 = vmax.f32 %v828_v21, %v929_v17  ;;  %2329 = vmatprep.subr.bf16.mxu1 %v2625_v56  ;;  %v964_v40 = vadd.f32 %v3002_v24, %v3015_v29 }
 0x154   :  { %v1082_v53 = vmax.f32 %v3285_v42, 0.0  ;;  %v1058_v13 = vmax.f32 %v3839_v6, %v1033_v52  ;;  %v945_v52 = vadd.f32 %v2978_v12, %v3015_v29  ;;  %v1079_v12 = vmax.f32 %v3270_v25, 0.0  ;;  %2330 = vmatpush3.bf16.msra.mxu1 %v2625_v56  ;;  %v2626_v6 = vld [vmem:[%s3788_s3 + $0x8] sm:$0xff]  }
 0x155   :  { %v1080_v60 = vmax.f32 %v3290_v4, 0.0  ;;  %v1056_v63 = vmax.f32 %v3840_v57, %v1031_v23  ;;  %v2291_v44 = vpop.f32.mrb[60].mxu0  ;;  %v3842_v56 = vmax.f32 %v3106_v47, %v3111_v45  ;;  %2331 = vmatprep.subr.bf16.mxu1 %v2626_v6  ;;  %v956_v47 = vadd.f32 %v3015_v29, %v3006_v26 }
 0x156   :  { %v849_v55 = vadd.f32 %v2291_v44, %v3015_v29  ;;  %v840_v16 = vpop.f32.mrb[61].mxu0  ;;  %v3843_v44 = vmax.f32 %v3128_v36, %v3131_v1  ;;  %v961_v36 = vadd.f32 %v2994_v20, %v3015_v29 }
 0x157   :  { %v3312_v17 = vmax.f32 %v1056_v63, 0.0  ;;  %v841_v34 = vadd.f32 %v3015_v29, %v840_v16  ;;  %v2292_v39 = vpop.f32.mrb[62].mxu0  ;;  %v3319_v18 = vpack.i.bf16 %v1082_v53, %v1080_v60 }
 0x158   :  { %v1036_v30 = vmax.f32 %v849_v55, %v948_v8  ;;  %v852_v49 = vadd.f32 %v2292_v39, %v3015_v29  ;;  %v843_v50 = vpop.f32.mrb[63].mxu0  ;;  %v1083_v8 = vmax.f32 %v1058_v13, 0.0  ;;  %v3844_v13 = vmax.f32 %v3135_v62, %v3138_v51  ;;  %2332 = vmatpush3.bf16.msra.mxu1 %v2626_v6  ;;  %v2627_v62 = vld [vmem:[%s3788_s3 + $0x10] sm:$0xff]  }
 0x159   :  { %v1034_v22 = vmax.f32 %v841_v34, %v940_v19  ;;  %v844_v9 = vadd.f32 %v3015_v29, %v843_v50  ;;  %2454 = vrot.lane.b32.xlu1 %v3319_v18, %s2681_s14  ;;  %v2463_v21 = vpack.i.bf16 %v3312_v17, %v1079_v12  ;;  %2333 = vmatprep.subr.bf16.mxu1 %v2627_v62 }
 0x15a   :  { %v1061_v14 = vmax.f32 %v3841_v10, %v1036_v30  ;;  %v1037_v23 = vmax.f32 %v852_v49, %v953_v61  ;;  %v3369_v61 = vpack.i.bf16 %v1083_v8, %v3312_v17  ;;  %v3845_v49 = vmax.f32 %v3187_v54, %v3192_v33 }
 0x15b   :  { %v3338_v57 = vmax.f32 %v3842_v56, %v1034_v22  ;;  %v1035_v63 = vmax.f32 %v844_v9, %v945_v52  ;;  %2464 = vrot.lane.b32.xlu0 %v2463_v21, %s2682_s17  ;;  %v969_v52 = vadd.f32 %v3015_v29, %v3017_v31  ;;  %v3846_v9 = vmax.f32 %v3142_v3, %v3147_v38 }
 0x15c   :  { %v3344_v41 = vmax.f32 %v3843_v44, %v1037_v23  ;;  %2334 = vmatpush3.bf16.msra.mxu1 %v2627_v62  ;;  %v3847_v6 = vmax.f32 %v3164_v0, %v3167_v7  ;;  %v980_v54 = vadd.f32 %v3027_v35, %v3015_v29  ;;  %v3394_v33 = vmax.f32 %v1061_v14, 0.0 }
 0x15d   :  { %v3351_v19 = vmax.f32 %v3844_v13, %v1035_v63  ;;  %v2295_v45 = vpop.f32.mrb[64].mxu0  ;;  %2459 = vrot.lane.b32.xlu1 %v3319_v18, %s2682_s17  ;;  %v3848_v38 = vmax.f32 %v3171_v2, %v3174_v59  ;;  %v972_v44 = vadd.f32 %v3015_v29, %v3029_v37  ;;  %v977_v0 = vadd.f32 %v3010_v28, %v3015_v29  ;;  %v2628_v28 = vld [vmem:[%s3788_s3 + $0x18] sm:$0xff]  }
 0x15e   :  { %v865_v1 = vadd.f32 %v2295_v45, %v3015_v29  ;;  %v856_v24 = vpop.f32.mrb[65].mxu0  ;;  %v1087_v51 = vmax.f32 %v3344_v41, 0.0  ;;  %v985_v14 = vadd.f32 %v3015_v29, %v3051_v48  ;;  %v2629_v48 = vld [vmem:[%s3788_s3 + $0x20] sm:$0xff]   ;;  %2335 = vmatprep.subr.bf16.mxu1 %v2628_v28 }
 0x15f   :  { %v1085_v26 = vmax.f32 %v3351_v19, 0.0  ;;  %v857_v55 = vadd.f32 %v3015_v29, %v856_v24  ;;  %v2296_v16 = vpop.f32.mrb[66].mxu0 }
 0x160   :  { %v1040_v20 = vmax.f32 %v865_v1, %v964_v40  ;;  %v868_v34 = vadd.f32 %v2296_v16, %v3015_v29  ;;  %v859_v39 = vpop.f32.mrb[67].mxu0  ;;  %2336 = vmatpush3.bf16.msra.mxu1 %v2628_v28  ;;  %v3850_v16 = vmax.f32 %v3178_v11, %v3183_v32  ;;  %v2630_v32 = vld [vmem:[%s3788_s3 + $0x28] sm:$0xff]  }
 0x161   :  { %v1038_v31 = vmax.f32 %v857_v55, %v956_v47  ;;  %v860_v30 = vadd.f32 %v3015_v29, %v859_v39  ;;  %2469 = vrot.lane.b32.xlu1 %v3369_v61, %s2681_s14  ;;  %v3387_v23 = vpack.i.bf16 %v1087_v51, %v1085_v26  ;;  %2337 = vmatprep.subr.bf16.mxu1 %v2629_v48 }
 0x162   :  { %v3378_v50 = vmax.f32 %v3845_v49, %v1040_v20  ;;  %v1041_v22 = vmax.f32 %v868_v34, %v969_v52  ;;  %v3849_v52 = vmax.f32 %v3223_v46, %v3228_v43  ;;  %v3852_v46 = vld [vmem:[#allocation12_spill] sm:$0xff] }
 0x163   :  { %v1063_v21 = vmax.f32 %v3846_v9, %v1038_v31  ;;  %v1039_v10 = vmax.f32 %v860_v30, %v961_v36  ;;  %v3851_v31 = vmax.f32 %v3200_v5, %v3203_v15  ;;  %v996_v43 = vadd.f32 %v3852_v46, %v3015_v29  ;;  %v3854_v9 = vld [vmem:[#allocation19_spill] sm:$0xff] }
 0x164   :  { %v1066_v8 = vmax.f32 %v3847_v6, %v1041_v22  ;;  %v1090_v11 = vmax.f32 %v3378_v50, 0.0  ;;  %v3853_v22 = vld [vmem:[#allocation18_spill] sm:$0xff]  ;;  %v3856_v5 = vld [vmem:[#allocation15_spill] sm:$0xff]  ;;  %2338 = vmatpush3.bf16.msra.mxu1 %v2629_v48  ;;  %v1084_v48 = vmax.f32 %v3338_v57, 0.0 }
 0x165   :  { %v1088_v56 = vmax.f32 %v1063_v21, 0.0  ;;  %v3399_v3 = vmax.f32 %v3848_v38, %v1039_v10  ;;  %v2299_v63 = vpop.f32.mrb[68].mxu0  ;;  %2474 = vrot.lane.b32.xlu1 %v3387_v23, %s2683_s20  ;;  %v3855_v21 = vmax.f32 %v3853_v22, %v3854_v9  ;;  %v988_v15 = vadd.f32 %v3015_v29, %v3856_v5  ;;  %2339 = vmatprep.subr.bf16.mxu1 %v2630_v32  ;;  %v3863_v22 = vld [vmem:[#allocation9_spill] sm:$0xff]  ;;  %v3864_v9 = vld [vmem:[#allocation10_spill] sm:$0xff] }
 0x166   :  { %v881_v35 = vadd.f32 %v2299_v63, %v3015_v29  ;;  %v872_v7 = vpop.f32.mrb[69].mxu0  ;;  %v3410_v2 = vmax.f32 %v1066_v8, 0.0  ;;  %v3857_v8 = vld [vmem:[#allocation11_spill] sm:$0xff]  ;;  %v2634_v50 = vld [vmem:[%s3790_s5 + $0x8] sm:$0xff]  }
 0x167   :  { %v1089_v59 = vmax.f32 %v3399_v3, 0.0  ;;  %v873_v40 = vadd.f32 %v3015_v29, %v872_v7  ;;  %v2300_v37 = vpop.f32.mrb[70].mxu0  ;;  %v3415_v13 = vpack.i.bf16 %v1088_v56, %v3394_v33  ;;  %v3858_v7 = vld [vmem:[#allocation22_spill] sm:$0xff] }
 0x168   :  { %v1044_v45 = vmax.f32 %v881_v35, %v980_v54  ;;  %v884_v47 = vadd.f32 %v2300_v37, %v3015_v29  ;;  %v875_v36 = vpop.f32.mrb[71].mxu0  ;;  %v993_v54 = vadd.f32 %v3857_v8, %v3015_v29  ;;  %2340 = vmatpush3.bf16.msra.mxu1 %v2630_v32  ;;  %v3867_v32 = vld [vmem:[#allocation23_spill] sm:$0xff] }
 0x169   :  { %v1042_v1 = vmax.f32 %v873_v40, %v972_v44  ;;  %v876_v24 = vadd.f32 %v3015_v29, %v875_v36  ;;  %2479 = vrot.lane.b32.xlu0 %v3415_v13, %s2683_s20  ;;  %v2483_v39 = vpack.i.bf16 %v3410_v2, %v1089_v59 }
 0x16a   :  { %v1069_v62 = vmax.f32 %v3849_v52, %v1044_v45  ;;  %v1045_v55 = vmax.f32 %v884_v47, %v985_v14  ;;  %v801_v14 = vadd.f32 %v3858_v7, %v3015_v29  ;;  %v2631_v45 = vld [vmem:[%s3788_s3 + $0x30] sm:$0xff]  }
 0x16b   :  { %v3433_v20 = vmax.f32 %v3850_v16, %v1042_v1  ;;  %v1043_v34 = vmax.f32 %v876_v24, %v977_v0  ;;  %v3859_v1 = vmax.f32 %v3247_v58, %v3252_v27  ;;  %v3861_v16 = vld [vmem:[#allocation21_spill] sm:$0xff]  ;;  %2341 = vmatprep.subr.bf16.mxu1 %v2631_v45 }
 0x16c   :  { %v3441_v30 = vmax.f32 %v3851_v31, %v1045_v55  ;;  %v3860_v55 = vld [vmem:[#allocation20_spill] sm:$0xff]  ;;  %v1094_v27 = vmax.f32 %v1069_v62, 0.0  ;;  %v2513_v62 = vpack.i.bf16 %v3394_v33, %v1084_v48  ;;  %2342 = vmatpush3.bf16.msra.mxu1 %v2631_v45 }
 0x16d   :  { %v1092_v49 = vmax.f32 %v3433_v20, 0.0  ;;  %v1068_v10 = vmax.f32 %v3855_v21, %v1043_v34  ;;  %v2303_v6 = vpop.f32.mrb[72].mxu0  ;;  %2484 = vrot.lane.b32.xlu0 %v2483_v39, %s2682_s17  ;;  %v3862_v34 = vmax.f32 %v3860_v55, %v3861_v16  ;;  %v3865_v21 = vmax.f32 %v3863_v22, %v3864_v9  ;;  %v3874_v22 = vld [vmem:[#allocation14_spill] sm:$0xff]  ;;  %v2633_v20 = vld [vmem:[%s3790_s5] sm:$0xff]  }
 0x16e   :  { %v897_v56 = vadd.f32 %v2303_v6, %v3015_v29  ;;  %v888_v38 = vpop.f32.mrb[73].mxu0  ;;  %v3866_v6 = vld [vmem:[#allocation25_spill] sm:$0xff] }
 0x16f   :  { %v1093_v63 = vmax.f32 %v1068_v10, 0.0  ;;  %v889_v44 = vadd.f32 %v3015_v29, %v888_v38  ;;  %v2304_v0 = vpop.f32.mrb[74].mxu0  ;;  %v3464_v35 = vpack.i.bf16 %v1092_v49, %v1090_v11  ;;  %v804_v58 = vadd.f32 %v3866_v6, %v3015_v29 }
 0x170   :  { %v1048_v40 = vmax.f32 %v897_v56, %v996_v43  ;;  %v900_v37 = vadd.f32 %v2304_v0, %v3015_v29  ;;  %v891_v28 = vpop.f32.mrb[75].mxu0 }
 0x171   :  { %v1046_v47 = vmax.f32 %v889_v44, %v988_v15  ;;  %v892_v36 = vadd.f32 %v3015_v29, %v891_v28  ;;  %2489 = vrot.lane.b32.xlu1 %v3464_v35, %s2681_s14  ;;  %2494 = vrot.lane.b32.xlu0 %v3464_v35, %s2682_s17  ;;  %v2498_v46 = vpack.i.bf16 %v1093_v63, %v3410_v2  ;;  %v3868_v15 = vld [vmem:[#allocation24_spill] sm:$0xff]  ;;  %v1095_v44 = vmax.f32 %v3441_v30, 0.0  ;;  %v3871_v30 = vld [vmem:[#allocation26_spill] sm:$0xff] }
 0x172   :  { %v1073_v24 = vmax.f32 %v3859_v1, %v1048_v40  ;;  %v1024_v52 = vmax.f32 %v801_v14, %v900_v37  ;;  %v3869_v8 = vmax.f32 %v3867_v32, %v3868_v15  ;;  %v817_v1 = vadd.f32 %v3871_v30, %v3015_v29 }
 0x173   :  { %v1071_v39 = vmax.f32 %v3862_v34, %v1046_v47  ;;  %v1047_v31 = vmax.f32 %v892_v36, %v993_v54  ;;  %v3870_v54 = vld [vmem:[#allocation28_spill] sm:$0xff] }
 0x174   :  { %v1098_v43 = vmax.f32 %v1073_v24, 0.0  ;;  %v3488_v10 = vmax.f32 %v3865_v21, %v1024_v52  ;;  %v812_v63 = vadd.f32 %v3015_v29, %v3870_v54  ;;  %v2632_v36 = vld [vmem:[%s3788_s3 + $0x38] sm:$0xff]  }
 0x175   :  { %v1096_v5 = vmax.f32 %v1071_v39, 0.0  ;;  %v1072_v56 = vmax.f32 %v3869_v8, %v1047_v31  ;;  %v2307_v38 = vpop.f32.mrb[76].mxu0  ;;  %2499 = vrot.lane.b32.xlu1 %v2498_v46, %s2681_s14  ;;  %v3872_v24 = vld [vmem:[#allocation27_spill] sm:$0xff]  ;;  %2343 = vmatprep.subr.bf16.mxu1 %v2632_v36 }
 0x176   :  { %v913_v0 = vadd.f32 %v2307_v38, %v3015_v29  ;;  %v904_v7 = vpop.f32.mrb[77].mxu0  ;;  %v809_v52 = vadd.f32 %v3015_v29, %v3872_v24  ;;  %2344 = vmatpush3.bf16.msra.mxu1 %v2632_v36 }
 0x177   :  { %v1097_v14 = vmax.f32 %v1072_v56, 0.0  ;;  %v905_v40 = vadd.f32 %v3015_v29, %v904_v7  ;;  %v2308_v37 = vpop.f32.mrb[78].mxu0  ;;  %v2568_v28 = vpack.i.bf16 %v1098_v43, %v1096_v5  ;;  %v2533_v47 = vpack.i.bf16 %v1096_v5, %v1094_v27  ;;  %v3873_v43 = vld [vmem:[#allocation13_spill] sm:$0xff]  ;;  %v3877_v5 = vld [vmem:[#allocation6_spill] sm:$0xff] }
 0x178   :  { %v1027_v55 = vmax.f32 %v812_v63, %v913_v0  ;;  %v916_v16 = vadd.f32 %v2308_v37, %v3015_v29  ;;  %v907_v45 = vpop.f32.mrb[79].mxu0  ;;  %v3875_v9 = vmax.f32 %v3873_v43, %v3874_v22  ;;  %v3876_v27 = vld [vmem:[#allocation5_spill] sm:$0xff]  ;;  %v3883_v0 = vld [vmem:[#allocation8_spill] sm:$0xff] }
 0x179   :  { %v1025_v34 = vmax.f32 %v804_v58, %v905_v40  ;;  %v908_v39 = vadd.f32 %v3015_v29, %v907_v45  ;;  %2514 = vrot.lane.b32.xlu1 %v2513_v62, %s2682_s17  ;;  %v2538_v31 = vpack.i.bf16 %v1097_v14, %v1095_v44  ;;  %v3878_v32 = vmax.f32 %v3876_v27, %v3877_v5  ;;  %v3879_v29 = vld [vmem:[#allocation16_spill] sm:$0xff]  ;;  %v3880_v56 = vld [vmem:[#allocation17_spill] sm:$0xff]  ;;  %v3882_v44 = vld [vmem:[#allocation7_spill] sm:$0xff] }
 0x17a   :  { %v3517_v21 = vmax.f32 %v3875_v9, %v1027_v55  ;;  %v1028_v6 = vmax.f32 %v817_v1, %v916_v16  ;;  %v3881_v38 = vmax.f32 %v3879_v29, %v3880_v56  ;;  %v3884_v7 = vmax.f32 %v3882_v44, %v3883_v0 }
 0x17b   :  { %v3522_v15 = vmax.f32 %v3878_v32, %v1025_v34  ;;  %v1026_v8 = vmax.f32 %v809_v52, %v908_v39 }
 0x17c   :  { %v1077_v58 = vmax.f32 %v3517_v21, 0.0  ;;  %v1053_v54 = vmax.f32 %v3881_v38, %v1028_v6 }
 0x17d   :  { %v1075_v63 = vmax.f32 %v3522_v15, 0.0  ;;  %v1051_v62 = vmax.f32 %v3884_v7, %v1026_v8  ;;  %2529 = vrot.lane.b32.xlu1 %v3387_v23, %s2681_s14 }
 0x17e   :  { %v1078_v40 = vmax.f32 %v1053_v54, 0.0 }
 0x17f   :  { %v2503_v14 = vpack.i.bf16 %v1077_v58, %v1075_v63  ;;  %v1076_v37 = vmax.f32 %v1051_v62, 0.0 }
 0x181   :  { %2539 = vrot.lane.b32.xlu1 %v2538_v31, %s2681_s14  ;;  %2504 = vrot.lane.b32.xlu0 %v2503_v14, %s2683_s20  ;;  %v2518_v36 = vpack.i.bf16 %v1078_v40, %v1076_v37 }
 0x185   :  { %2549 = vrot.lane.b32.xlu1 %v3387_v23, %s2682_s17  ;;  %2509 = vrot.lane.b32.xlu0 %v3319_v18, %s2683_s20 }
 0x189   :  { %2559 = vrot.lane.b32.xlu1 %v3415_v13, %s2681_s14  ;;  %2519 = vrot.lane.b32.xlu0 %v2518_v36, %s2683_s20 }
 0x18d   :  { %2569 = vrot.lane.b32.xlu1 %v2568_v28, %s2681_s14  ;;  %2524 = vrot.lane.b32.xlu0 %v3464_v35, %s2683_s20 }
 0x191   :  { %2534 = vrot.lane.b32.xlu0 %v2533_v47, %s2682_s17 }
 0x195   :  { %2544 = vrot.lane.b32.xlu0 %v3369_v61, %s2683_s20 }
 0x199   :  { %2554 = vrot.lane.b32.xlu0 %v2498_v46, %s2683_s20  ;;  %v1074_v46 = vmax.f32 %v3488_v10, 0.0 }
 0x19d   :  { %2564 = vrot.lane.b32.xlu0 %v2538_v31, %s2682_s17 }
 0x1cb   :  { %v2455_v18 = vpop.permute.xlu1 %2454 }
 0x1cc   :  { %v2457_v55 = vunpack.i.h.bf16 %v2455_v18  ;;  %v2456_v16 = vunpack.i.l.bf16 %v2455_v18 }
 0x1cd   :  { %v2465_v30 = vpop.permute.xlu0 %2464 }
 0x1ce   :  { %v2467_v39 = vunpack.i.h.bf16 %v2465_v30  ;;  %v2466_v31 = vunpack.i.l.bf16 %v2465_v30 }
 0x1cf   :  { %v3555_v23 = vpop.permute.xlu1 %2459 }
 0x1d0   :  { %v2462_v8 = vunpack.i.h.bf16 %v3555_v23  ;;  %v2461_v10 = vunpack.i.l.bf16 %v3555_v23 }
 0x1d3   :  { %v3557_v13 = vpop.permute.xlu1 %2469 }
 0x1d4   :  { %v2472_v29 = vunpack.i.h.bf16 %v3557_v13  ;;  %v2471_v56 = vunpack.i.l.bf16 %v3557_v13 }
 0x1d7   :  { %v2475_v1 = vpop.permute.xlu1 %2474 }
 0x1d8   :  { %v2477_v45 = vunpack.i.h.bf16 %v2475_v1  ;;  %v2476_v34 = vunpack.i.l.bf16 %v2475_v1 }
 0x1da   :  { %v1159_v54 = vsel %vm1111_vm3, %v3394_v33, %v2477_v45  ;;  %v1144_v44 = vsel %vm1111_vm3, %v1084_v48, %v2476_v34 }
 0x1db   :  { %v3559_v28 = vpop.permute.xlu0 %2479 }
 0x1dc   :  { %v2482_v48 = vunpack.i.h.bf16 %v3559_v28 }
 0x1de   :  { %v1213_v25 = vsel %vm1111_vm3, %v1087_v51, %v2482_v48 }
 0x1df   :  { %v2485_v35 = vpop.permute.xlu0 %2484 }
 0x1e0   :  { %v2487_v43 = vunpack.i.h.bf16 %v2485_v35  ;;  %v2486_v22 = vunpack.i.l.bf16 %v2485_v35 }
 0x1e2   :  { %v1160_v62 = vsel %vm1113_vm4, %v1159_v54, %v2487_v43  ;;  %v1145_v14 = vsel %vm1113_vm4, %v1144_v44, %v2486_v22 }
 0x1e3   :  { %v2490_v24 = vpop.permute.xlu1 %2489  ;;  %v3563_v47 = vpop.permute.xlu0 %2494 }
 0x1e4   :  { %v2492_v6 = vunpack.i.h.bf16 %v2490_v24  ;;  %v2491_v27 = vunpack.i.l.bf16 %v2490_v24  ;;  %v2497_v24 = vunpack.i.h.bf16 %v3563_v47 }
 0x1e6   :  { %v1146_v23 = vsel %vm1115_vm5, %v1145_v14, %v2491_v27  ;;  %v1161_v33 = vsel %vm1115_vm5, %v1160_v62, %v2492_v6  ;;  %v1214_v19 = vsel %vm1113_vm4, %v1213_v25, %v2497_v24 }
 0x1e7   :  { %v3561_v52 = vpop.permute.xlu1 %2499  ;;  %v1319_v34 = vpack.c.bf16 %v1161_v33, %v1146_v23 }
 0x1eb   :  { %v2515_v61 = vpop.permute.xlu1 %2514 }
 0x1ec   :  { %v2516_v43 = vunpack.i.l.bf16 %v2515_v61 }
 0x1ef   :  { %v2530_v38 = vpop.permute.xlu1 %2529 }
 0x1f0   :  { %v2531_v27 = vunpack.i.l.bf16 %v2530_v38 }
 0x1f3   :  { %v2505_v9 = vpop.permute.xlu0 %2504 }
 0x1f4   :  { %v2507_v5 = vunpack.i.h.bf16 %v2505_v9  ;;  %v2506_v32 = vunpack.i.l.bf16 %v2505_v9 }
 0x1f6   :  { %v1129_v0 = vsel %vm1111_vm3, %v1076_v37, %v2507_v5  ;;  %v1112_v7 = vsel %vm1111_vm3, %v1074_v46, %v2506_v32  ;;  %v2481_v37 = vunpack.i.l.bf16 %v3559_v28  ;;  %v2540_v28 = vpop.permute.xlu1 %2539 }
 0x1f7   :  { %v2510_v40 = vpop.permute.xlu0 %2509  ;;  %v1114_v36 = vsel %vm1113_vm4, %v1112_v7, %v2466_v31  ;;  %v1130_v18 = vsel %vm1113_vm4, %v1129_v0, %v2467_v39  ;;  %v2496_v39 = vunpack.i.l.bf16 %v3563_v47  ;;  %v2517_v31 = vunpack.i.h.bf16 %v2515_v61 }
 0x1f8   :  { %v2512_v57 = vunpack.i.h.bf16 %v2510_v40  ;;  %v2511_v13 = vunpack.i.l.bf16 %v2510_v40  ;;  %v1116_v30 = vsel %vm1115_vm5, %v1114_v36, %v2456_v16  ;;  %v1131_v1 = vsel %vm1115_vm5, %v1130_v18, %v2457_v55 }
 0x1f9   :  { %v1318_v45 = vpack.c.bf16 %v1131_v1, %v1116_v30  ;;  %v2502_v16 = vunpack.i.h.bf16 %v3561_v52  ;;  %v2501_v55 = vunpack.i.l.bf16 %v3561_v52  ;;  %v2532_v61 = vunpack.i.h.bf16 %v2530_v38 }
 0x1fa   :  { %v1238_v35 = vsel %vm1111_vm3, %v3312_v17, %v2512_v57  ;;  %v1226_v46 = vsel %vm1111_vm3, %v1079_v12, %v2511_v13  ;;  %v1199_v17 = vsel %vm1111_vm3, %v1085_v26, %v2481_v37  ;;  %v2550_v15 = vpop.permute.xlu1 %2549  ;;  %v2542_v33 = vunpack.i.h.bf16 %v2540_v28 }
 0x1fb   :  { %v2520_v22 = vpop.permute.xlu0 %2519  ;;  %2345 = vmatprep.mubr.bf16.mxu1 %v1318_v45  ;;  %v1227_v12 = vsel %vm1113_vm4, %v1226_v46, %v2516_v43  ;;  %v1239_v47 = vsel %vm1113_vm4, %v1238_v35, %v2517_v31  ;;  %v1200_v51 = vsel %vm1113_vm4, %v1199_v17, %v2496_v39  ;;  %v1215_v38 = vsel %vm1115_vm5, %v1214_v19, %v2502_v16 }
 0x1fc   :  { %v2522_v9 = vunpack.i.h.bf16 %v2520_v22  ;;  %v2521_v6 = vunpack.i.l.bf16 %v2520_v22  ;;  %2346 = vmatmul.mubr.bf16.vlgmr.msra.gmra.mrb[20].mxu1 %v1319_v34  ;;  %v1201_v54 = vsel %vm1115_vm5, %v1200_v51, %v2501_v55  ;;  %v1228_v21 = vsel %vm1115_vm5, %v1227_v12, %v2531_v27 }
 0x1fd   :  { %v2541_v57 = vunpack.i.l.bf16 %v2540_v28  ;;  %v2552_v24 = vunpack.i.h.bf16 %v2550_v15  ;;  %v2551_v3 = vunpack.i.l.bf16 %v2550_v15  ;;  %v2684_v51 = vmov 0.0  }
 0x1fe   :  { %v1186_v52 = vsel %vm1111_vm3, %v1077_v58, %v2522_v9  ;;  %v1172_v41 = vsel %vm1111_vm3, %v1075_v63, %v2521_v6  ;;  %v1240_v58 = vsel %vm1115_vm5, %v1239_v47, %v2532_v61  ;;  %v2560_v13 = vpop.permute.xlu1 %2559  ;;  %2361 = vmatprep.subr.bf16.mxu1 %v2684_v51  ;;  %v2685_v19 = vmov 0  }
 0x1ff   :  { %v2525_v26 = vpop.permute.xlu0 %2524  ;;  %v1173_v5 = vsel %vm1113_vm4, %v1172_v41, %v2461_v10  ;;  %v1187_v32 = vsel %vm1113_vm4, %v1186_v52, %v2462_v8  ;;  %v1321_v10 = vpack.c.bf16 %v1215_v38, %v1201_v54  ;;  %v1322_v36 = vpack.c.bf16 %v1240_v58, %v1228_v21  ;;  %2362 = vmatpush3.bf16.msra.mxu1 %v2633_v20  ;;  %v2069_v58 = vld [vmem:[%s3789_s4] ss:$0 sm:$0xff]  ;;  %v2643_v20 = vld [vmem:[%s3790_s5 + $0x48] sm:$0xff]  }
 0x200   :  { %v2527_v44 = vunpack.i.h.bf16 %v2525_v26  ;;  %v2526_v63 = vunpack.i.l.bf16 %v2525_v26  ;;  %v1174_v0 = vsel %vm1115_vm5, %v1173_v5, %v2471_v56  ;;  %v1188_v7 = vsel %vm1115_vm5, %v1187_v32, %v2472_v29  ;;  %2363 = vmatprep.subr.bf16.mxu1 %v2684_v51 }
 0x201   :  { %v1320_v62 = vpack.c.bf16 %v1188_v7, %v1174_v0  ;;  %v2562_v35 = vunpack.i.h.bf16 %v2560_v13  ;;  %v3665_v26 = vsel %vm1544_vm6, 65535, %v2685_v19  ;;  %v2645_v19 = vld [vmem:[%s3790_s5 + $0x54] sm:$0xff]  }
 0x202   :  { %v1266_v18 = vsel %vm1111_vm3, %v3410_v2, %v2527_v44  ;;  %v1252_v23 = vsel %vm1111_vm3, %v1089_v59, %v2526_v63  ;;  %v2561_v59 = vunpack.i.l.bf16 %v2560_v13  ;;  %v2570_v9 = vpop.permute.xlu1 %2569 }
 0x203   :  { %v2535_v14 = vpop.permute.xlu0 %2534  ;;  %2349 = vmatprep.mubr.bf16.mxu1 %v1320_v62  ;;  %v2571_v25 = vunpack.i.l.bf16 %v2570_v9  ;;  %2364 = vmatpush3.bf16.msra.mxu1 %v2634_v50  ;;  %v2644_v50 = vld [vmem:[%s3790_s5 + $0x50] ss:$0 sps:$4 sm:$0x11]  }
 0x204   :  { %v2537_v40 = vunpack.i.h.bf16 %v2535_v14  ;;  %v2536_v8 = vunpack.i.l.bf16 %v2535_v14  ;;  %2350 = vmatmul.mubr.bf16.gmra.mrb[24].mxu1 %v1321_v10  ;;  %2365 = vmatprep.subr.bf16.mxu1 %v2684_v51 }
 0x205   :  { %2353 = vmatprep.mubr.bf16.mxu1 %v1322_v36 }
 0x206   :  { %v1253_v56 = vsel %vm1113_vm4, %v1252_v23, %v2536_v8  ;;  %v1267_v29 = vsel %vm1113_vm4, %v1266_v18, %v2537_v40 }
 0x207   :  { %v2545_v48 = vpop.permute.xlu0 %2544  ;;  %v1254_v1 = vsel %vm1115_vm5, %v1253_v56, %v2541_v57  ;;  %v1268_v2 = vsel %vm1115_vm5, %v1267_v29, %v2542_v33 }
 0x208   :  { %v2547_v37 = vunpack.i.h.bf16 %v2545_v48  ;;  %v2546_v30 = vunpack.i.l.bf16 %v2545_v48  ;;  %v1323_v39 = vpack.c.bf16 %v1268_v2, %v1254_v1 }
 0x20a   :  { %v1290_v46 = vsel %vm1111_vm3, %v1082_v53, %v2547_v37  ;;  %v1278_v45 = vsel %vm1111_vm3, %v1080_v60, %v2546_v30  ;;  %v2572_v60 = vunpack.i.h.bf16 %v2570_v9 }
 0x20b   :  { %v2555_v34 = vpop.permute.xlu0 %2554  ;;  %v1279_v31 = vsel %vm1113_vm4, %v1278_v45, %v2551_v3  ;;  %v1291_v43 = vsel %vm1113_vm4, %v1290_v46, %v2552_v24 }
 0x20c   :  { %v1280_v28 = vsel %vm1115_vm5, %v1279_v31, %v2561_v59  ;;  %v1292_v22 = vsel %vm1115_vm5, %v1291_v43, %v2562_v35  ;;  %v2557_v16 = vunpack.i.h.bf16 %v2555_v34  ;;  %v2556_v55 = vunpack.i.l.bf16 %v2555_v34  ;;  %2354 = vmatmul.mubr.bf16.gmra.mrb[28].mxu1 %v1323_v39 }
 0x20d   :  { %v1324_v42 = vpack.c.bf16 %v1292_v22, %v1280_v28 }
 0x20e   :  { %v1315_v17 = vsel %vm1111_vm3, %v1092_v49, %v2557_v16  ;;  %v1302_v12 = vsel %vm1111_vm3, %v1090_v11, %v2556_v55  ;;  %v2635_v11 = vld [vmem:[%s3790_s5 + $0x10] sm:$0xff]   ;;  %v2636_v49 = vld [vmem:[%s3790_s5 + $0x18] ss:$0 sps:$4 sm:$0x11]  }
 0x20f   :  { %v2565_v53 = vpop.permute.xlu0 %2564  ;;  %2357 = vmatprep.mubr.bf16.mxu1 %v1324_v42  ;;  %2366 = vmatpush3.bf16.msra.mxu1 %v2635_v11  ;;  %v1548_v5 = vand.u32 %v2636_v49, %v3665_v26  ;;  %v1708_v11 = vand.u32 %v2644_v50, %v3665_v26 }
 0x210   :  { %v2567_v4 = vunpack.i.h.bf16 %v2565_v53  ;;  %v2566_v6 = vunpack.i.l.bf16 %v2565_v53  ;;  %2367 = vmatprep.subr.bf16.mxu1 %v2684_v51 }
 0x212   :  { %v1303_v47 = vsel %vm1113_vm4, %v1302_v12, %v2566_v6  ;;  %v1316_v61 = vsel %vm1113_vm4, %v1315_v17, %v2567_v4  ;;  %v2637_v6 = vld [vmem:[%s3790_s5 + $0x1c] sm:$0xff]   ;;  %v2639_v17 = vld [vmem:[%s3790_s5 + $0x2c] sm:$0xff]   ;;  %v2640_v12 = vld [vmem:[%s3790_s5 + $0x34] ss:$0 sps:$4 sm:$0x11]  }
 0x213   :  { %v1304_v27 = vsel %vm1115_vm5, %v1303_v47, %v2571_v25  ;;  %v1317_v52 = vsel %vm1115_vm5, %v1316_v61, %v2572_v60  ;;  %2368 = vmatpush3.bf16.msra.mxu1 %v1548_v5  ;;  %v2638_v25 = vld [vmem:[%s3790_s5 + $0x24] sm:$0xff]   ;;  %v1631_v47 = vand.u32 %v2640_v12, %v3665_v26 }
 0x214   :  { %v1325_v41 = vpack.c.bf16 %v1317_v52, %v1304_v27  ;;  %2373 = vmatprep.subr.bf16.mxu1 %v2684_v51  ;;  %v2641_v27 = vld [vmem:[%s3790_s5 + $0x38] sm:$0xff]  }
 0x216   :  { %2358 = vmatmul.mubr.bf16.gmra.mrb[32].mxu1 %v1325_v41  ;;  %v2642_v41 = vld [vmem:[%s3790_s5 + $0x40] sm:$0xff]  }
 0x217   :  { %2369 = vmatprep.mubr.msk.bf16.mxu1 %vm2686_vm7, %v2684_v51 }
 0x2cf   :  { %v2347_v32 = vpop.f32.mrb[20].mxu1 }
 0x2d0   :  { %v1431_v54 = vpop.f32.mrb[21].mxu1  ;;  %v1440_v44 = vadd.f32 %v2347_v32, %v2069_v58  ;;  %v2646_v32 = vld [vmem:[%s3790_s5 + $0x5c] sm:$0xff]  }
 0x2d1   :  { %v2348_v38 = vpop.f32.mrb[22].mxu1  ;;  %v1432_v7 = vadd.f32 %v2069_v58, %v1431_v54  ;;  %v2647_v54 = vld [vmem:[%s3790_s5 + $0x64] sm:$0xff]  }
 0x2d2   :  { %v1434_v21 = vpop.f32.mrb[23].mxu1  ;;  %v1443_v10 = vadd.f32 %v2348_v38, %v2069_v58  ;;  %v2648_v38 = vld [vmem:[%s3790_s5 + $0x6c] ss:$0 sps:$4 sm:$0x11]  }
 0x2d3   :  { %v1435_v18 = vadd.f32 %v2069_v58, %v1434_v21  ;;  %v1785_v21 = vand.u32 %v2648_v38, %v3665_v26  ;;  %v2651_v26 = vld [vmem:[%s3792_s7 + $0x10] sm:$0xff]  }
 0x2d7   :  { %v2351_v15 = vpop.f32.mrb[24].mxu1 }
 0x2d8   :  { %v1456_v63 = vadd.f32 %v2351_v15, %v2069_v58  ;;  %v1447_v0 = vpop.f32.mrb[25].mxu1  ;;  %v2649_v15 = vld [vmem:[%s3792_s7] sm:$0xff]  }
 0x2d9   :  { %v1448_v62 = vadd.f32 %v2069_v58, %v1447_v0  ;;  %v2352_v14 = vpop.f32.mrb[26].mxu1  ;;  %v2652_v0 = vld [vmem:[%s3792_s7 + $0x18] sm:$0xff]  }
 0x2da   :  { %v1496_v40 = vmax.f32 %v1440_v44, %v1456_v63  ;;  %v1459_v8 = vadd.f32 %v2352_v14, %v2069_v58  ;;  %v1450_v36 = vpop.f32.mrb[27].mxu1  ;;  %v2650_v63 = vld [vmem:[%s3792_s7 + $0x8] sm:$0xff]   ;;  %v2655_v14 = vld [vmem:[%s3792_s7 + $0x30] ss:$0 sps:$4 sm:$0x33]  }
 0x2db   :  { %v1494_v23 = vmax.f32 %v1432_v7, %v1448_v62  ;;  %v1451_v33 = vadd.f32 %v2069_v58, %v1450_v36  ;;  %v2653_v7 = vld [vmem:[%s3792_s7 + $0x20] sm:$0xff]   ;;  %v2654_v62 = vld [vmem:[%s3792_s7 + $0x28] sm:$0xff]  }
 0x2dc   :  { %v1497_v57 = vmax.f32 %v1443_v10, %v1459_v8  ;;  %v1895_v10 = vsel %vm1893_vm9, %v2655_v14, 0 }
 0x2dd   :  { %v1495_v56 = vmax.f32 %v1435_v18, %v1451_v33 }
 0x2df   :  { %v2355_v29 = vpop.f32.mrb[28].mxu1 }
 0x2e0   :  { %v1463_v13 = vpop.f32.mrb[29].mxu1  ;;  %v1472_v1 = vadd.f32 %v2355_v29, %v2069_v58 }
 0x2e1   :  { %v2356_v48 = vpop.f32.mrb[30].mxu1  ;;  %v1464_v3 = vadd.f32 %v2069_v58, %v1463_v13 }
 0x2e2   :  { %v1466_v37 = vpop.f32.mrb[31].mxu1  ;;  %v1475_v46 = vadd.f32 %v2356_v48, %v2069_v58 }
 0x2e3   :  { %v1467_v31 = vadd.f32 %v2069_v58, %v1466_v37 }
 0x2e9   :  { %v2359_v30 = vpop.f32.mrb[32].mxu1 }
 0x2ea   :  { %v1488_v2 = vadd.f32 %v2359_v30, %v2069_v58  ;;  %v1479_v24 = vpop.f32.mrb[33].mxu1 }
 0x2eb   :  { %v1480_v35 = vadd.f32 %v2069_v58, %v1479_v24  ;;  %v2360_v59 = vpop.f32.mrb[34].mxu1 }
 0x2ec   :  { %v1500_v45 = vmax.f32 %v1472_v1, %v1488_v2  ;;  %v1491_v34 = vadd.f32 %v2360_v59, %v2069_v58  ;;  %v1482_v39 = vpop.f32.mrb[35].mxu1 }
 0x2ed   :  { %v1498_v43 = vmax.f32 %v1464_v3, %v1480_v35  ;;  %v1483_v28 = vadd.f32 %v2069_v58, %v1482_v39 }
 0x2ee   :  { %v1504_v22 = vmax.f32 %v1496_v40, %v1500_v45  ;;  %v1501_v16 = vmax.f32 %v1475_v46, %v1491_v34  ;;  %v2083_v40 = vld [vmem:[%s3791_s6] ss:$0 sm:$0xff] }
 0x2ef   :  { %v1502_v55 = vmax.f32 %v1494_v23, %v1498_v43  ;;  %v1499_v42 = vmax.f32 %v1467_v31, %v1483_v28 }
 0x2f0   :  { %v1505_v9 = vmax.f32 %v1497_v57, %v1501_v16  ;;  %v1508_v49 = vmax.f32 %v1504_v22, 0.0 }
 0x2f1   :  { %v1506_v53 = vmax.f32 %v1502_v55, 0.0  ;;  %v1503_v4 = vmax.f32 %v1495_v56, %v1499_v42 }
 0x2f2   :  { %v1674_v5 = vpack.c.bf16 %v1508_v49, %v1508_v49  ;;  %v1509_v58 = vmax.f32 %v1505_v9, 0.0 }
 0x2f3   :  { %v1511_v60 = vpack.c.bf16 %v1506_v53, %v1506_v53  ;;  %v1507_v61 = vmax.f32 %v1503_v4, 0.0 }
 0x2f4   :  { %v1751_v44 = vpack.c.bf16 %v1509_v58, %v1509_v58 }
 0x2f5   :  { %2370 = vmatmul.mubr.msk.bf16.vlgmr.msra.gmra.mrb[36].mxu1 %vm1540_vm8, %v1511_v60  ;;  %v1597_v52 = vpack.c.bf16 %v1507_v61, %v1507_v61 }
 0x2f6   :  { %2374 = vmatpush3.bf16.msra.mxu1 %v2637_v6  ;;  %2381 = vmatprep.mubr.msk.bf16.mxu1 %vm2686_vm7, %v2684_v51 }
 0x2f7   :  { %2375 = vmatprep.subr.bf16.mxu1 %v2684_v51 }
 0x2fa   :  { %2376 = vmatpush3.bf16.msra.mxu1 %v2638_v25 }
 0x2fb   :  { %2377 = vmatprep.subr.bf16.mxu1 %v2684_v51 }
 0x2fe   :  { %2378 = vmatpush3.bf16.msra.mxu1 %v2639_v17 }
 0x2ff   :  { %2379 = vmatprep.subr.bf16.mxu1 %v2684_v51 }
 0x302   :  { %2380 = vmatpush3.bf16.msra.mxu1 %v1631_v47 }
 0x303   :  { %2385 = vmatprep.subr.bf16.mxu1 %v2684_v51 }
 0x305   :  { %2382 = vmatmul.mubr.msk.bf16.vlgmr.msra.gmra.mrb[36].mxu1 %vm1540_vm8, %v1597_v52 }
 0x306   :  { %2386 = vmatpush3.bf16.msra.mxu1 %v2641_v27  ;;  %2393 = vmatprep.mubr.msk.bf16.mxu1 %vm2686_vm7, %v2684_v51 }
 0x307   :  { %2387 = vmatprep.subr.bf16.mxu1 %v2684_v51 }
 0x30a   :  { %2388 = vmatpush3.bf16.msra.mxu1 %v2642_v41 }
 0x30b   :  { %2389 = vmatprep.subr.bf16.mxu1 %v2684_v51 }
 0x30e   :  { %2390 = vmatpush3.bf16.msra.mxu1 %v2643_v20 }
 0x30f   :  { %2391 = vmatprep.subr.bf16.mxu1 %v2684_v51 }
 0x312   :  { %2392 = vmatpush3.bf16.msra.mxu1 %v1708_v11 }
 0x313   :  { %2397 = vmatprep.subr.bf16.mxu1 %v2684_v51 }
 0x315   :  { %2394 = vmatmul.mubr.msk.bf16.vlgmr.msra.gmra.mrb[36].mxu1 %vm1540_vm8, %v1674_v5 }
 0x316   :  { %2398 = vmatpush3.bf16.msra.mxu1 %v2645_v19  ;;  %2405 = vmatprep.mubr.msk.bf16.mxu1 %vm2686_vm7, %v2684_v51 }
 0x317   :  { %2399 = vmatprep.subr.bf16.mxu1 %v2684_v51 }
 0x31a   :  { %2400 = vmatpush3.bf16.msra.mxu1 %v2646_v32 }
 0x31b   :  { %2401 = vmatprep.subr.bf16.mxu1 %v2684_v51 }
 0x31e   :  { %2402 = vmatpush3.bf16.msra.mxu1 %v2647_v54 }
 0x31f   :  { %2403 = vmatprep.subr.bf16.mxu1 %v2684_v51 }
 0x322   :  { %2404 = vmatpush3.bf16.msra.mxu1 %v1785_v21 }
 0x323   :  { %2409 = vmatprep.subr.bf16.mxu1 %v2684_v51 }
 0x325   :  { %2406 = vmatmul.mubr.msk.bf16.vlgmr.msra.gmra.mrb[36].mxu1 %vm1540_vm8, %v1751_v44 }
 0x326   :  { %2410 = vmatpush3.bf16.msra.mxu1 %v2649_v15  ;;  %2423 = vmatprep.mubr.msk.bf16.mxu1 %vm2686_vm7, %v2684_v51 }
 0x327   :  { %2411 = vmatprep.subr.bf16.mxu1 %v2684_v51 }
 0x32a   :  { %2412 = vmatpush3.bf16.msra.mxu1 %v2650_v63 }
 0x32b   :  { %2413 = vmatprep.subr.bf16.mxu1 %v2684_v51 }
 0x32e   :  { %2414 = vmatpush3.bf16.msra.mxu1 %v2651_v26 }
 0x32f   :  { %2415 = vmatprep.subr.bf16.mxu1 %v2684_v51 }
 0x332   :  { %2416 = vmatpush3.bf16.msra.mxu1 %v2652_v0 }
 0x333   :  { %2417 = vmatprep.subr.bf16.mxu1 %v2684_v51 }
 0x336   :  { %2418 = vmatpush3.bf16.msra.mxu1 %v2653_v7 }
 0x337   :  { %2419 = vmatprep.subr.bf16.mxu1 %v2684_v51 }
 0x33a   :  { %2420 = vmatpush3.bf16.msra.mxu1 %v2654_v62 }
 0x33b   :  { %2421 = vmatprep.subr.bf16.mxu1 %v2684_v51  ;;  %v2120_v51 = vld [vmem:[%s3793_s8] ss:$0 sm:$0xff]  ;;  %s2656_s8 = scalar_lea.vmem %s1957_s0, 32 }
 0x33c   :  { %p2657_p0 = scmp.ne.s32.totalorder %s1957_s0, %s2656_s8  ;;  %p2662_p2 = scmp.lt.s32.totalorder %s2656_s8, %s2656_s8 }
 0x33e   :  { %2422 = vmatpush3.bf16.msra.mxu1 %v1895_v10  ;;  %p2663_p3 = por %p2662_p2, %p2661_p1 }
 0x340   :  { %p2664_p4 = pnand %p2663_p3, %p2657_p0 }
 0x3f8   :  { %v1821_v8 = vpop.f32.mrb[36].mxu1 }
 0x3f9   :  { %v2431_v36 = vadd.f32 %v2083_v40, %v1821_v8  ;;  %v2407_v18 = vpop.f32.mrb[37].mxu1 }
 0x3fa   :  { %v1824_v23 = vpop.f32.mrb[38].mxu1 }
 0x3fb   :  { %v1828_v33 = vmax.f32 %v2431_v36, 0.0  ;;  %v2408_v57 = vpop.f32.mrb[39].mxu1 }
 0x3fd   :  { %v1829_v56 = vpack.c.bf16 %v1828_v33, %v1828_v33 }
 0x3ff   :  { %2424 = vmatmul.mubr.msk.bf16.vlgmr.msra.gmra.mrb[40].mxu1 %vm1889_vm10, %v1829_v56 }
 0x4d2   :  { %v1931_v29 = vpop.f32.mrb[40].mxu1 }
 0x4d3   :  { %v1932_v13 = vadd.f32 %v2120_v51, %v1931_v29  ;;  %v2425_v48 = vpop.f32.mrb[41].mxu1 }
 0x4d4   :  { %v1934_v37 = vpop.f32.mrb[42].mxu1 }
 0x4d5   :  { %v1937_v30 = vmax.f32 %v1932_v13, 0.0  ;;  %v2426_v1 = vpop.f32.mrb[43].mxu1 }
 0x4d7   :  { %1939 = vst.msk [vmem:[%s3794_s9] sm:$0xff] %vm1938_vm11, %v1937_v30  ;;  %1943 = vrot.lane.b32.xlu0 %v1937_v30, %s2687_s30 }
 0x4d8   :  { %1941 = vst.msk [vmem:[#allocation2] sm:$0x3] %vm1940_vm12, %v1937_v30 }
 0x549   :  { %v1944_v2 = vpop.permute.xlu0 %1943 }
 0x54a   :  { %1947 = vst.msk [vmem:[#allocation2 - $0x2] sm:$0xc] %vm1946_vm13, %v1944_v2 }
 0x54b   :  { %2667 = shalt.err (!%p2664_p4)
}
 0x54c   :  { %s2668_s9 = scalar_lea.hbm %s3795_s10, 32 }
 0x54d   :  { %p2669_p5 = scmp.ne.s32.totalorder %s3795_s10, %s2668_s9  ;;  %p2672_p6 = scmp.lt.u32.totalorder %s2668_s9, %s3795_s10 }
 0x54f   :  { %p2674_p7 = pnand %p2672_p6, %p2669_p5 }
 0x551   :  { %2677 = shalt.err (!%p2674_p7)
}
 0x552   :  { %1959 = dma.vmem_to_hbm [thread:$0]  %s1957_s0, 32, %s3795_s10, [#allocation3]  }
 0x553   :  { %2678 = dma.done.wait [#allocation3], 32  }
 0x554   :  { %2679 = vsyncadd [#allocation3], 4294967264 }
 0x555   :  { %1965 = vsyncpa [#allocation3], 1 }

</bundles_post_ra>
